<compile_context>
chip_gen: v7x
topology: tpu7x:2x2x1
jax: 0.10.0
libtpu: 0.0.40
codegen_flags: <defaults>
</compile_context>

<pallas_src>
import functools

import jax
import jax.numpy as jnp
from jax import lax
from jax.experimental import pallas as pl
from jax.experimental.pallas import tpu as pltpu

KSIZE = 7
PAD = 3


def _round_up(x, m):
    return (x + m - 1) // m * m


def _channel_chunk(C, dtype):
    """Channel-chunk size: prefer big, 8-aligned chunks that divide C."""
    cap = 64 if dtype == jnp.bfloat16 else 32
    for cb in range(min(C, cap), 0, -1):
        if C % cb == 0 and cb % 8 == 0:
            return cb
    for cb in range(min(C, cap), 0, -1):
        if C % cb == 0:
            return cb
    return 1


def _spatial_attention_kernel(w_ref, x_ref, o_ref, avg_pad, max_pad,
                              *, W, cb, pflat):
    # w_ref:   SMEM (2*49,) f32     conv1 weights, index [c*49 + ky*7 + kx]
    # x_ref:   VMEM (1, C, H*W)     one image, lane-dense
    # o_ref:   VMEM (1, C, H*W)
    # avg_pad: VMEM (1, pflat + H*W + pflat) f32   flat zero-padded avg map
    # max_pad: VMEM (1, pflat + H*W + pflat) f32   flat zero-padded max map
    _, C, HW = x_ref.shape
    nchunks = C // cb
    unroll = nchunks <= 8
    inv_c = 1.0 / C

    # ---- channel mean / max, chunked so x never lives across the conv ----
    def reduce_body(i, carry):
        s, m = carry
        start = pl.multiple_of(i * cb, cb)
        blk = x_ref[0, pl.ds(start, cb), :].astype(jnp.float32)   # (cb, HW)
        return (s + jnp.sum(blk, axis=0, keepdims=True),
                jnp.maximum(m, jnp.max(blk, axis=0, keepdims=True)))

    ssum, smax = lax.fori_loop(
        0, nchunks, reduce_body,
        (jnp.zeros((1, HW), jnp.float32),
         jnp.full((1, HW), -jnp.inf, jnp.float32)),
        unroll=unroll)

    # ---- write avg / max maps into the flat zero-padded scratches ----
    # Only the two pflat-wide halos need zeroing; the interior is overwritten.
    zeros_halo = jnp.zeros((1, pflat), jnp.float32)
    avg_pad[:, pl.ds(0, pflat)] = zeros_halo
    avg_pad[:, pl.ds(pflat + HW, pflat)] = zeros_halo
    max_pad[:, pl.ds(0, pflat)] = zeros_halo
    max_pad[:, pl.ds(pflat + HW, pflat)] = zeros_halo
    avg_pad[:, pl.ds(pflat, HW)] = ssum * inv_c
    max_pad[:, pl.ds(pflat, HW)] = smax

    # ---- 7x7 "same" conv, entirely on the VPU in exact f32 ----
    # out[p] = sum_{dy,dx,c} w[c,dy,dx] * map_c[p + dy*W + dx]
    # Vertical out-of-range taps read zeros from the flat halo (pflat >= 3W+3);
    # the horizontal (column) border only depends on dx -> 7 masks, not 49.
    col = lax.broadcasted_iota(jnp.int32, (1, HW), 1) % W
    acc = jnp.zeros((1, HW), jnp.float32)
    for kx in range(KSIZE):
        dx = kx - PAD
        col_ok = jnp.logical_and(col >= -dx, col < W - dx)
        part = jnp.zeros((1, HW), jnp.float32)
        for ky in range(KSIZE):
            dy = ky - PAD
            start = pflat + dy * W + dx                    # static, >= 0
            a_sh = avg_pad[:, pl.ds(start, HW)]
            m_sh = max_pad[:, pl.ds(start, HW)]
            w_a = w_ref[ky * KSIZE + kx]
            w_m = w_ref[KSIZE * KSIZE + ky * KSIZE + kx]
            part = part + w_a * a_sh + w_m * m_sh
        acc = acc + jnp.where(col_ok, part, 0.0)

    gate = jax.nn.sigmoid(acc)                              # (1, HW) f32

    # ---- gate + ReLU; broadcast hoisted out of the store loop ----
    # TODO(synk): when x is bf16 on v6e/v7x, keep the gate*x math in bf16.
    gate_cb = jnp.broadcast_to(gate, (cb, HW))

    def gate_body(i, carry):
        start = pl.multiple_of(i * cb, cb)
        blk = x_ref[0, pl.ds(start, cb), :].astype(jnp.float32)
        o_ref[0, pl.ds(start, cb), :] = jnp.maximum(
            blk * gate_cb, 0.0).astype(o_ref.dtype)
        return carry

    lax.fori_loop(0, nchunks, gate_body, 0, unroll=unroll)


def spatial_attention(x, conv_weight):
    """x: (N, C, H, W); conv_weight: (1, 2, 7, 7) f32  ->  (N, C, H, W)."""
    N, C, H, W = x.shape
    HW = H * W

    # Lane-dense view of x (wrapper-side reshape is free layout plumbing).
    x2 = x.reshape(N, C, HW)
    w_flat = conv_weight.astype(jnp.float32).reshape(2 * KSIZE * KSIZE)

    cb = _channel_chunk(C, x.dtype)
    # Flat halo must cover the largest flat tap offset (3*W + 3); rounded to a
    # lane tile so the interior store stays unmasked whenever HW is 128-aligned.
    pflat = _round_up(PAD * W + PAD, 128)
    hwp = HW + 2 * pflat

    kernel = functools.partial(_spatial_attention_kernel,
                               W=W, cb=cb, pflat=pflat)

    # Advisory cost estimate: HBM-bandwidth-bound (read + write x once).
    flops = int(N * (4 * C * HW + 4 * KSIZE * KSIZE * HW))
    bytes_accessed = int(2 * N * C * HW * x.dtype.itemsize
                         + 2 * KSIZE * KSIZE * 4)
    transcendentals = int(N * HW)

    # Size the scoped-VMEM request from the real footprint (in + out blocks
    # are double-buffered) with headroom; cap well below v7x's 64 MiB.
    block_bytes = C * HW * x.dtype.itemsize
    vmem_limit = int(min(96 * 2**20,
                         max(32 * 2**20,
                             4 * block_bytes + 16 * hwp * 4 + (2 << 20))))

    # TODO(synk): for production-size feature maps (esp. v7x, 64 MiB VMEM)
    # tile H with a +/-3-row halo and add that tile as a second "parallel"
    # grid axis so both v7x TensorCores stay busy even when N == 1.
    out = pl.pallas_call(
        kernel,
        out_shape=jax.ShapeDtypeStruct((N, C, HW), x.dtype),
        grid=(N,),
        in_specs=[
            # 98 conv-weight scalars, resident in SMEM (no buffering needed).
            pl.BlockSpec(memory_space=pltpu.MemorySpace.SMEM),
            # One image per grid step, lane-dense last dim H*W.
            pl.BlockSpec((1, C, HW), lambda n: (n, 0, 0)),
        ],
        out_specs=pl.BlockSpec((1, C, HW), lambda n: (n, 0, 0)),
        scratch_shapes=[pltpu.VMEM((1, hwp), jnp.float32),
                        pltpu.VMEM((1, hwp), jnp.float32)],
        compiler_params=pltpu.CompilerParams(
            dimension_semantics=("parallel",),
            vmem_limit_bytes=vmem_limit),
        cost_estimate=pl.CostEstimate(
            flops=flops,
            transcendentals=transcendentals,
            bytes_accessed=bytes_accessed),
    )(w_flat, x2)

    return out.reshape(N, C, H, W)


def _reference(x, conv_weight):
    avg = jnp.mean(x, axis=1, keepdims=True)
    mx = jnp.max(x, axis=1, keepdims=True)
    cat = jnp.concatenate([avg, mx], axis=1)
    conv = lax.conv_general_dilated(
        cat, conv_weight, window_strides=(1, 1),
        padding=[(PAD, PAD), (PAD, PAD)],
        dimension_numbers=("NCHW", "OIHW", "NCHW"),
        precision=lax.Precision.HIGHEST)
    return jnp.maximum(jax.nn.sigmoid(conv) * x, 0.0)


if __name__ == "__main__":
    key = jax.random.PRNGKey(0)
    kx, kw = jax.random.split(key)

    N, C, H, W = 2, 4, 16, 16
    x = jax.random.normal(kx, (N, C, H, W), dtype=jnp.float32)

    # Deterministic synthetic conv1 weights (1 out-ch, 2 in-ch, 7x7, no bias),
    # roughly matching PyTorch's default kaiming-uniform scale.
    fan_in = 2 * KSIZE * KSIZE
    bound = 1.0 / jnp.sqrt(fan_in)
    conv_w = jax.random.uniform(
        kw, (1, 2, KSIZE, KSIZE), dtype=jnp.float32, minval=-bound, maxval=bound)

    out = spatial_attention(x, conv_w)
    out = jax.block_until_ready(out)

    ref = _reference(x, conv_w)
    assert out.shape == ref.shape
    assert jnp.allclose(out, ref, atol=1e-4, rtol=1e-4), "mismatch vs reference"

    print("KERNEL_OK")
</pallas_src>

<mosaic_0001>
module attributes {stable_mosaic.version = 11 : i64} {
  func.func @_spatial_attention_kernel(%arg0: i32, %arg1: memref<98xf32, #tpu.memory_space<smem>>, %arg2: memref<1x4x256xf32, #tpu.memory_space<vmem>>, %arg3: memref<1x4x256xf32, #tpu.memory_space<vmem>>, %arg4: memref<1x512xf32, #tpu.memory_space<vmem>>, %arg5: memref<1x512xf32, #tpu.memory_space<vmem>>) attributes {dimension_semantics = [#tpu.dimension_semantics<parallel>], iteration_bounds = array<i64: 2>, scalar_prefetch = 0 : i64, scratch_operands = 2 : i64, tpu.core_type = #tpu.core_type<tc>, window_params = [{transform_indices = @transform_0, window_bounds = array<i64: 98>}, {transform_indices = @transform_1, window_bounds = array<i64: 1, 4, 256>}, {transform_indices = @transform_2, window_bounds = array<i64: 1, 4, 256>}]} {
    %cst = arith.constant 0.000000e+00 : f32
    %0 = vector.broadcast %cst : f32 to vector<1x256xf32>
    %cst_0 = arith.constant 0xFF800000 : f32
    %1 = vector.broadcast %cst_0 : f32 to vector<1x256xf32>
    %c0_i32 = arith.constant 0 : i32
    %c4_i32 = arith.constant 4 : i32
    %2 = arith.muli %c0_i32, %c4_i32 : i32
    %3 = tpu.assume_multiple %2, 4 : i32
    %c0 = arith.constant 0 : index
    %4 = arith.index_cast %3 : i32 to index
    %c0_1 = arith.constant 0 : index
    %5 = vector.load %arg2[%c0, %4, %c0_1] : memref<1x4x256xf32, #tpu.memory_space<vmem>>, vector<1x4x256xf32>
    %6 = vector.shape_cast %5 : vector<1x4x256xf32> to vector<4x256xf32>
    %cst_2 = arith.constant dense<0.000000e+00> : vector<256xf32>
    %7 = vector.multi_reduction <add>, %6, %cst_2 [0] : vector<4x256xf32> to vector<256xf32>
    %8 = vector.shape_cast %7 : vector<256xf32> to vector<1x256xf32>
    %9 = arith.addf %0, %8 : vector<1x256xf32>
    %cst_3 = arith.constant dense<0xFF800000> : vector<256xf32>
    %10 = vector.multi_reduction <maximumf>, %6, %cst_3 [0] : vector<4x256xf32> to vector<256xf32>
    %11 = vector.shape_cast %10 : vector<256xf32> to vector<1x256xf32>
    %12 = arith.maximumf %1, %11 : vector<1x256xf32>
    %c1_i32 = arith.constant 1 : i32
    %cst_4 = arith.constant 0.000000e+00 : f32
    %13 = vector.broadcast %cst_4 : f32 to vector<1x128xf32>
    %c0_5 = arith.constant 0 : index
    %c0_6 = arith.constant 0 : index
    %14 = vector.load %arg4[%c0_5, %c0_6] : memref<1x512xf32, #tpu.memory_space<vmem>>, vector<1x128xf32>
    tpu.vector_store %arg4[%c0_5, %c0_6], %13 {strides = array<i32>} : memref<1x512xf32, #tpu.memory_space<vmem>>, vector<1x128xf32>,
    %c0_7 = arith.constant 0 : index
    %c384 = arith.constant 384 : index
    %15 = vector.load %arg4[%c0_7, %c384] : memref<1x512xf32, #tpu.memory_space<vmem>>, vector<1x128xf32>
    tpu.vector_store %arg4[%c0_7, %c384], %13 {strides = array<i32>} : memref<1x512xf32, #tpu.memory_space<vmem>>, vector<1x128xf32>,
    %c0_8 = arith.constant 0 : index
    %c0_9 = arith.constant 0 : index
    %16 = vector.load %arg5[%c0_8, %c0_9] : memref<1x512xf32, #tpu.memory_space<vmem>>, vector<1x128xf32>
    tpu.vector_store %arg5[%c0_8, %c0_9], %13 {strides = array<i32>} : memref<1x512xf32, #tpu.memory_space<vmem>>, vector<1x128xf32>,
    %c0_10 = arith.constant 0 : index
    %c384_11 = arith.constant 384 : index
    %17 = vector.load %arg5[%c0_10, %c384_11] : memref<1x512xf32, #tpu.memory_space<vmem>>, vector<1x128xf32>
    tpu.vector_store %arg5[%c0_10, %c384_11], %13 {strides = array<i32>} : memref<1x512xf32, #tpu.memory_space<vmem>>, vector<1x128xf32>,
    %cst_12 = arith.constant 2.500000e-01 : f32
    %18 = vector.broadcast %cst_12 : f32 to vector<1x256xf32>
    %19 = arith.mulf %9, %18 : vector<1x256xf32>
    %c0_13 = arith.constant 0 : index
    %c128 = arith.constant 128 : index
    %20 = vector.load %arg4[%c0_13, %c128] : memref<1x512xf32, #tpu.memory_space<vmem>>, vector<1x256xf32>
    tpu.vector_store %arg4[%c0_13, %c128], %19 {strides = array<i32>} : memref<1x512xf32, #tpu.memory_space<vmem>>, vector<1x256xf32>,
    %c0_14 = arith.constant 0 : index
    %c128_15 = arith.constant 128 : index
    %21 = vector.load %arg5[%c0_14, %c128_15] : memref<1x512xf32, #tpu.memory_space<vmem>>, vector<1x256xf32>
    tpu.vector_store %arg5[%c0_14, %c128_15], %12 {strides = array<i32>} : memref<1x512xf32, #tpu.memory_space<vmem>>, vector<1x256xf32>,
    %22 = tpu.iota {dimensions = array<i32: 1>} : vector<1x256xi32>
    %c16_i32 = arith.constant 16 : i32
    %c0_i32_16 = arith.constant 0 : i32
    %23 = arith.cmpi eq, %c16_i32, %c0_i32_16 : i32
    %c1_i32_17 = arith.constant 1 : i32
    %24 = arith.select %23, %c1_i32_17, %c16_i32 : i32
    %25 = vector.broadcast %24 : i32 to vector<1x256xi32>
    %26 = arith.remsi %22, %25 : vector<1x256xi32>
    %c0_i32_18 = arith.constant 0 : i32
    %27 = vector.broadcast %c0_i32_18 : i32 to vector<1x256xi32>
    %28 = arith.cmpi ne, %26, %27 : vector<1x256xi32>
    %c0_i32_19 = arith.constant 0 : i32
    %29 = vector.broadcast %c0_i32_19 : i32 to vector<1x256xi32>
    %30 = arith.cmpi slt, %26, %29 : vector<1x256xi32>
    %c0_i32_20 = arith.constant 0 : i32
    %31 = arith.cmpi slt, %24, %c0_i32_20 : i32
    %32 = vector.broadcast %31 : i1 to vector<1x256xi1>
    %33 = vector.broadcast %32 : vector<1x256xi1> to vector<1x256xi1>
    %34 = arith.xori %30, %33 : vector<1x256xi1>
    %35 = arith.andi %34, %28 : vector<1x256xi1>
    %36 = vector.broadcast %24 : i32 to vector<1x256xi32>
    %37 = arith.addi %26, %36 : vector<1x256xi32>
    %38 = arith.select %35, %37, %26 : vector<1x256xi1>, vector<1x256xi32>
    %cst_21 = arith.constant 0.000000e+00 : f32
    %39 = vector.broadcast %cst_21 : f32 to vector<1x256xf32>
    %c3_i32 = arith.constant 3 : i32
    %40 = vector.broadcast %c3_i32 : i32 to vector<1x256xi32>
    %41 = arith.cmpi sge, %38, %40 : vector<1x256xi32>
    %c19_i32 = arith.constant 19 : i32
    %42 = vector.broadcast %c19_i32 : i32 to vector<1x256xi32>
    %43 = arith.cmpi slt, %38, %42 : vector<1x256xi32>
    %44 = arith.andi %41, %43 : vector<1x256xi1>
    %cst_22 = arith.constant 0.000000e+00 : f32
    %45 = vector.broadcast %cst_22 : f32 to vector<1x256xf32>
    %c0_23 = arith.constant 0 : index
    %c77 = arith.constant 77 : index
    %46 = vector.load %arg4[%c0_23, %c77] : memref<1x512xf32, #tpu.memory_space<vmem>>, vector<1x256xf32>
    %c0_24 = arith.constant 0 : index
    %c77_25 = arith.constant 77 : index
    %47 = vector.load %arg5[%c0_24, %c77_25] : memref<1x512xf32, #tpu.memory_space<vmem>>, vector<1x256xf32>
    %c0_26 = arith.constant 0 : index
    %48 = memref.load %arg1[%c0_26] : memref<98xf32, #tpu.memory_space<smem>>
    %c49 = arith.constant 49 : index
    %49 = memref.load %arg1[%c49] : memref<98xf32, #tpu.memory_space<smem>>
    %50 = vector.broadcast %48 : f32 to vector<1x256xf32>
    %51 = arith.mulf %50, %46 : vector<1x256xf32>
    %52 = arith.addf %45, %51 : vector<1x256xf32>
    %53 = vector.broadcast %49 : f32 to vector<1x256xf32>
    %54 = arith.mulf %53, %47 : vector<1x256xf32>
    %55 = arith.addf %52, %54 : vector<1x256xf32>
    %c0_27 = arith.constant 0 : index
    %c93 = arith.constant 93 : index
    %56 = vector.load %arg4[%c0_27, %c93] : memref<1x512xf32, #tpu.memory_space<vmem>>, vector<1x256xf32>
    %c0_28 = arith.constant 0 : index
    %c93_29 = arith.constant 93 : index
    %57 = vector.load %arg5[%c0_28, %c93_29] : memref<1x512xf32, #tpu.memory_space<vmem>>, vector<1x256xf32>
    %c7 = arith.constant 7 : index
    %58 = memref.load %arg1[%c7] : memref<98xf32, #tpu.memory_space<smem>>
    %c56 = arith.constant 56 : index
    %59 = memref.load %arg1[%c56] : memref<98xf32, #tpu.memory_space<smem>>
    %60 = vector.broadcast %58 : f32 to vector<1x256xf32>
    %61 = arith.mulf %60, %56 : vector<1x256xf32>
    %62 = arith.addf %55, %61 : vector<1x256xf32>
    %63 = vector.broadcast %59 : f32 to vector<1x256xf32>
    %64 = arith.mulf %63, %57 : vector<1x256xf32>
    %65 = arith.addf %62, %64 : vector<1x256xf32>
    %c0_30 = arith.constant 0 : index
    %c109 = arith.constant 109 : index
    %66 = vector.load %arg4[%c0_30, %c109] : memref<1x512xf32, #tpu.memory_space<vmem>>, vector<1x256xf32>
    %c0_31 = arith.constant 0 : index
    %c109_32 = arith.constant 109 : index
    %67 = vector.load %arg5[%c0_31, %c109_32] : memref<1x512xf32, #tpu.memory_space<vmem>>, vector<1x256xf32>
    %c14 = arith.constant 14 : index
    %68 = memref.load %arg1[%c14] : memref<98xf32, #tpu.memory_space<smem>>
    %c63 = arith.constant 63 : index
    %69 = memref.load %arg1[%c63] : memref<98xf32, #tpu.memory_space<smem>>
    %70 = vector.broadcast %68 : f32 to vector<1x256xf32>
    %71 = arith.mulf %70, %66 : vector<1x256xf32>
    %72 = arith.addf %65, %71 : vector<1x256xf32>
    %73 = vector.broadcast %69 : f32 to vector<1x256xf32>
    %74 = arith.mulf %73, %67 : vector<1x256xf32>
    %75 = arith.addf %72, %74 : vector<1x256xf32>
    %c0_33 = arith.constant 0 : index
    %c125 = arith.constant 125 : index
    %76 = vector.load %arg4[%c0_33, %c125] : memref<1x512xf32, #tpu.memory_space<vmem>>, vector<1x256xf32>
    %c0_34 = arith.constant 0 : index
    %c125_35 = arith.constant 125 : index
    %77 = vector.load %arg5[%c0_34, %c125_35] : memref<1x512xf32, #tpu.memory_space<vmem>>, vector<1x256xf32>
    %c21 = arith.constant 21 : index
    %78 = memref.load %arg1[%c21] : memref<98xf32, #tpu.memory_space<smem>>
    %c70 = arith.constant 70 : index
    %79 = memref.load %arg1[%c70] : memref<98xf32, #tpu.memory_space<smem>>
    %80 = vector.broadcast %78 : f32 to vector<1x256xf32>
    %81 = arith.mulf %80, %76 : vector<1x256xf32>
    %82 = arith.addf %75, %81 : vector<1x256xf32>
    %83 = vector.broadcast %79 : f32 to vector<1x256xf32>
    %84 = arith.mulf %83, %77 : vector<1x256xf32>
    %85 = arith.addf %82, %84 : vector<1x256xf32>
    %c0_36 = arith.constant 0 : index
    %c141 = arith.constant 141 : index
    %86 = vector.load %arg4[%c0_36, %c141] : memref<1x512xf32, #tpu.memory_space<vmem>>, vector<1x256xf32>
    %c0_37 = arith.constant 0 : index
    %c141_38 = arith.constant 141 : index
    %87 = vector.load %arg5[%c0_37, %c141_38] : memref<1x512xf32, #tpu.memory_space<vmem>>, vector<1x256xf32>
    %c28 = arith.constant 28 : index
    %88 = memref.load %arg1[%c28] : memref<98xf32, #tpu.memory_space<smem>>
    %c77_39 = arith.constant 77 : index
    %89 = memref.load %arg1[%c77_39] : memref<98xf32, #tpu.memory_space<smem>>
    %90 = vector.broadcast %88 : f32 to vector<1x256xf32>
    %91 = arith.mulf %90, %86 : vector<1x256xf32>
    %92 = arith.addf %85, %91 : vector<1x256xf32>
    %93 = vector.broadcast %89 : f32 to vector<1x256xf32>
    %94 = arith.mulf %93, %87 : vector<1x256xf32>
    %95 = arith.addf %92, %94 : vector<1x256xf32>
    %c0_40 = arith.constant 0 : index
    %c157 = arith.constant 157 : index
    %96 = vector.load %arg4[%c0_40, %c157] : memref<1x512xf32, #tpu.memory_space<vmem>>, vector<1x256xf32>
    %c0_41 = arith.constant 0 : index
    %c157_42 = arith.constant 157 : index
    %97 = vector.load %arg5[%c0_41, %c157_42] : memref<1x512xf32, #tpu.memory_space<vmem>>, vector<1x256xf32>
    %c35 = arith.constant 35 : index
    %98 = memref.load %arg1[%c35] : memref<98xf32, #tpu.memory_space<smem>>
    %c84 = arith.constant 84 : index
    %99 = memref.load %arg1[%c84] : memref<98xf32, #tpu.memory_space<smem>>
    %100 = vector.broadcast %98 : f32 to vector<1x256xf32>
    %101 = arith.mulf %100, %96 : vector<1x256xf32>
    %102 = arith.addf %95, %101 : vector<1x256xf32>
    %103 = vector.broadcast %99 : f32 to vector<1x256xf32>
    %104 = arith.mulf %103, %97 : vector<1x256xf32>
    %105 = arith.addf %102, %104 : vector<1x256xf32>
    %c0_43 = arith.constant 0 : index
    %c173 = arith.constant 173 : index
    %106 = vector.load %arg4[%c0_43, %c173] : memref<1x512xf32, #tpu.memory_space<vmem>>, vector<1x256xf32>
    %c0_44 = arith.constant 0 : index
    %c173_45 = arith.constant 173 : index
    %107 = vector.load %arg5[%c0_44, %c173_45] : memref<1x512xf32, #tpu.memory_space<vmem>>, vector<1x256xf32>
    %c42 = arith.constant 42 : index
    %108 = memref.load %arg1[%c42] : memref<98xf32, #tpu.memory_space<smem>>
    %c91 = arith.constant 91 : index
    %109 = memref.load %arg1[%c91] : memref<98xf32, #tpu.memory_space<smem>>
    %110 = vector.broadcast %108 : f32 to vector<1x256xf32>
    %111 = arith.mulf %110, %106 : vector<1x256xf32>
    %112 = arith.addf %105, %111 : vector<1x256xf32>
    %113 = vector.broadcast %109 : f32 to vector<1x256xf32>
    %114 = arith.mulf %113, %107 : vector<1x256xf32>
    %115 = arith.addf %112, %114 : vector<1x256xf32>
    %cst_46 = arith.constant 0.000000e+00 : f32
    %116 = vector.broadcast %cst_46 : f32 to vector<1x256xf32>
    %117 = arith.select %44, %115, %116 : vector<1x256xi1>, vector<1x256xf32>
    %118 = arith.addf %39, %117 : vector<1x256xf32>
    %c2_i32 = arith.constant 2 : i32
    %119 = vector.broadcast %c2_i32 : i32 to vector<1x256xi32>
    %120 = arith.cmpi sge, %38, %119 : vector<1x256xi32>
    %c18_i32 = arith.constant 18 : i32
    %121 = vector.broadcast %c18_i32 : i32 to vector<1x256xi32>
    %122 = arith.cmpi slt, %38, %121 : vector<1x256xi32>
    %123 = arith.andi %120, %122 : vector<1x256xi1>
    %cst_47 = arith.constant 0.000000e+00 : f32
    %124 = vector.broadcast %cst_47 : f32 to vector<1x256xf32>
    %c0_48 = arith.constant 0 : index
    %c78 = arith.constant 78 : index
    %125 = vector.load %arg4[%c0_48, %c78] : memref<1x512xf32, #tpu.memory_space<vmem>>, vector<1x256xf32>
    %c0_49 = arith.constant 0 : index
    %c78_50 = arith.constant 78 : index
    %126 = vector.load %arg5[%c0_49, %c78_50] : memref<1x512xf32, #tpu.memory_space<vmem>>, vector<1x256xf32>
    %c1 = arith.constant 1 : index
    %127 = memref.load %arg1[%c1] : memref<98xf32, #tpu.memory_space<smem>>
    %c50 = arith.constant 50 : index
    %128 = memref.load %arg1[%c50] : memref<98xf32, #tpu.memory_space<smem>>
    %129 = vector.broadcast %127 : f32 to vector<1x256xf32>
    %130 = arith.mulf %129, %125 : vector<1x256xf32>
    %131 = arith.addf %124, %130 : vector<1x256xf32>
    %132 = vector.broadcast %128 : f32 to vector<1x256xf32>
    %133 = arith.mulf %132, %126 : vector<1x256xf32>
    %134 = arith.addf %131, %133 : vector<1x256xf32>
    %c0_51 = arith.constant 0 : index
    %c94 = arith.constant 94 : index
    %135 = vector.load %arg4[%c0_51, %c94] : memref<1x512xf32, #tpu.memory_space<vmem>>, vector<1x256xf32>
    %c0_52 = arith.constant 0 : index
    %c94_53 = arith.constant 94 : index
    %136 = vector.load %arg5[%c0_52, %c94_53] : memref<1x512xf32, #tpu.memory_space<vmem>>, vector<1x256xf32>
    %c8 = arith.constant 8 : index
    %137 = memref.load %arg1[%c8] : memref<98xf32, #tpu.memory_space<smem>>
    %c57 = arith.constant 57 : index
    %138 = memref.load %arg1[%c57] : memref<98xf32, #tpu.memory_space<smem>>
    %139 = vector.broadcast %137 : f32 to vector<1x256xf32>
    %140 = arith.mulf %139, %135 : vector<1x256xf32>
    %141 = arith.addf %134, %140 : vector<1x256xf32>
    %142 = vector.broadcast %138 : f32 to vector<1x256xf32>
    %143 = arith.mulf %142, %136 : vector<1x256xf32>
    %144 = arith.addf %141, %143 : vector<1x256xf32>
    %c0_54 = arith.constant 0 : index
    %c110 = arith.constant 110 : index
    %145 = vector.load %arg4[%c0_54, %c110] : memref<1x512xf32, #tpu.memory_space<vmem>>, vector<1x256xf32>
    %c0_55 = arith.constant 0 : index
    %c110_56 = arith.constant 110 : index
    %146 = vector.load %arg5[%c0_55, %c110_56] : memref<1x512xf32, #tpu.memory_space<vmem>>, vector<1x256xf32>
    %c15 = arith.constant 15 : index
    %147 = memref.load %arg1[%c15] : memref<98xf32, #tpu.memory_space<smem>>
    %c64 = arith.constant 64 : index
    %148 = memref.load %arg1[%c64] : memref<98xf32, #tpu.memory_space<smem>>
    %149 = vector.broadcast %147 : f32 to vector<1x256xf32>
    %150 = arith.mulf %149, %145 : vector<1x256xf32>
    %151 = arith.addf %144, %150 : vector<1x256xf32>
    %152 = vector.broadcast %148 : f32 to vector<1x256xf32>
    %153 = arith.mulf %152, %146 : vector<1x256xf32>
    %154 = arith.addf %151, %153 : vector<1x256xf32>
    %c0_57 = arith.constant 0 : index
    %c126 = arith.constant 126 : index
    %155 = vector.load %arg4[%c0_57, %c126] : memref<1x512xf32, #tpu.memory_space<vmem>>, vector<1x256xf32>
    %c0_58 = arith.constant 0 : index
    %c126_59 = arith.constant 126 : index
    %156 = vector.load %arg5[%c0_58, %c126_59] : memref<1x512xf32, #tpu.memory_space<vmem>>, vector<1x256xf32>
    %c22 = arith.constant 22 : index
    %157 = memref.load %arg1[%c22] : memref<98xf32, #tpu.memory_space<smem>>
    %c71 = arith.constant 71 : index
    %158 = memref.load %arg1[%c71] : memref<98xf32, #tpu.memory_space<smem>>
    %159 = vector.broadcast %157 : f32 to vector<1x256xf32>
    %160 = arith.mulf %159, %155 : vector<1x256xf32>
    %161 = arith.addf %154, %160 : vector<1x256xf32>
    %162 = vector.broadcast %158 : f32 to vector<1x256xf32>
    %163 = arith.mulf %162, %156 : vector<1x256xf32>
    %164 = arith.addf %161, %163 : vector<1x256xf32>
    %c0_60 = arith.constant 0 : index
    %c142 = arith.constant 142 : index
    %165 = vector.load %arg4[%c0_60, %c142] : memref<1x512xf32, #tpu.memory_space<vmem>>, vector<1x256xf32>
    %c0_61 = arith.constant 0 : index
    %c142_62 = arith.constant 142 : index
    %166 = vector.load %arg5[%c0_61, %c142_62] : memref<1x512xf32, #tpu.memory_space<vmem>>, vector<1x256xf32>
    %c29 = arith.constant 29 : index
    %167 = memref.load %arg1[%c29] : memref<98xf32, #tpu.memory_space<smem>>
    %c78_63 = arith.constant 78 : index
    %168 = memref.load %arg1[%c78_63] : memref<98xf32, #tpu.memory_space<smem>>
    %169 = vector.broadcast %167 : f32 to vector<1x256xf32>
    %170 = arith.mulf %169, %165 : vector<1x256xf32>
    %171 = arith.addf %164, %170 : vector<1x256xf32>
    %172 = vector.broadcast %168 : f32 to vector<1x256xf32>
    %173 = arith.mulf %172, %166 : vector<1x256xf32>
    %174 = arith.addf %171, %173 : vector<1x256xf32>
    %c0_64 = arith.constant 0 : index
    %c158 = arith.constant 158 : index
    %175 = vector.load %arg4[%c0_64, %c158] : memref<1x512xf32, #tpu.memory_space<vmem>>, vector<1x256xf32>
    %c0_65 = arith.constant 0 : index
    %c158_66 = arith.constant 158 : index
    %176 = vector.load %arg5[%c0_65, %c158_66] : memref<1x512xf32, #tpu.memory_space<vmem>>, vector<1x256xf32>
    %c36 = arith.constant 36 : index
    %177 = memref.load %arg1[%c36] : memref<98xf32, #tpu.memory_space<smem>>
    %c85 = arith.constant 85 : index
    %178 = memref.load %arg1[%c85] : memref<98xf32, #tpu.memory_space<smem>>
    %179 = vector.broadcast %177 : f32 to vector<1x256xf32>
    %180 = arith.mulf %179, %175 : vector<1x256xf32>
    %181 = arith.addf %174, %180 : vector<1x256xf32>
    %182 = vector.broadcast %178 : f32 to vector<1x256xf32>
    %183 = arith.mulf %182, %176 : vector<1x256xf32>
    %184 = arith.addf %181, %183 : vector<1x256xf32>
    %c0_67 = arith.constant 0 : index
    %c174 = arith.constant 174 : index
    %185 = vector.load %arg4[%c0_67, %c174] : memref<1x512xf32, #tpu.memory_space<vmem>>, vector<1x256xf32>
    %c0_68 = arith.constant 0 : index
    %c174_69 = arith.constant 174 : index
    %186 = vector.load %arg5[%c0_68, %c174_69] : memref<1x512xf32, #tpu.memory_space<vmem>>, vector<1x256xf32>
    %c43 = arith.constant 43 : index
    %187 = memref.load %arg1[%c43] : memref<98xf32, #tpu.memory_space<smem>>
    %c92 = arith.constant 92 : index
    %188 = memref.load %arg1[%c92] : memref<98xf32, #tpu.memory_space<smem>>
    %189 = vector.broadcast %187 : f32 to vector<1x256xf32>
    %190 = arith.mulf %189, %185 : vector<1x256xf32>
    %191 = arith.addf %184, %190 : vector<1x256xf32>
    %192 = vector.broadcast %188 : f32 to vector<1x256xf32>
    %193 = arith.mulf %192, %186 : vector<1x256xf32>
    %194 = arith.addf %191, %193 : vector<1x256xf32>
    %cst_70 = arith.constant 0.000000e+00 : f32
    %195 = vector.broadcast %cst_70 : f32 to vector<1x256xf32>
    %196 = arith.select %123, %194, %195 : vector<1x256xi1>, vector<1x256xf32>
    %197 = arith.addf %118, %196 : vector<1x256xf32>
    %c1_i32_71 = arith.constant 1 : i32
    %198 = vector.broadcast %c1_i32_71 : i32 to vector<1x256xi32>
    %199 = arith.cmpi sge, %38, %198 : vector<1x256xi32>
    %c17_i32 = arith.constant 17 : i32
    %200 = vector.broadcast %c17_i32 : i32 to vector<1x256xi32>
    %201 = arith.cmpi slt, %38, %200 : vector<1x256xi32>
    %202 = arith.andi %199, %201 : vector<1x256xi1>
    %cst_72 = arith.constant 0.000000e+00 : f32
    %203 = vector.broadcast %cst_72 : f32 to vector<1x256xf32>
    %c0_73 = arith.constant 0 : index
    %c79 = arith.constant 79 : index
    %204 = vector.load %arg4[%c0_73, %c79] : memref<1x512xf32, #tpu.memory_space<vmem>>, vector<1x256xf32>
    %c0_74 = arith.constant 0 : index
    %c79_75 = arith.constant 79 : index
    %205 = vector.load %arg5[%c0_74, %c79_75] : memref<1x512xf32, #tpu.memory_space<vmem>>, vector<1x256xf32>
    %c2 = arith.constant 2 : index
    %206 = memref.load %arg1[%c2] : memref<98xf32, #tpu.memory_space<smem>>
    %c51 = arith.constant 51 : index
    %207 = memref.load %arg1[%c51] : memref<98xf32, #tpu.memory_space<smem>>
    %208 = vector.broadcast %206 : f32 to vector<1x256xf32>
    %209 = arith.mulf %208, %204 : vector<1x256xf32>
    %210 = arith.addf %203, %209 : vector<1x256xf32>
    %211 = vector.broadcast %207 : f32 to vector<1x256xf32>
    %212 = arith.mulf %211, %205 : vector<1x256xf32>
    %213 = arith.addf %210, %212 : vector<1x256xf32>
    %c0_76 = arith.constant 0 : index
    %c95 = arith.constant 95 : index
    %214 = vector.load %arg4[%c0_76, %c95] : memref<1x512xf32, #tpu.memory_space<vmem>>, vector<1x256xf32>
    %c0_77 = arith.constant 0 : index
    %c95_78 = arith.constant 95 : index
    %215 = vector.load %arg5[%c0_77, %c95_78] : memref<1x512xf32, #tpu.memory_space<vmem>>, vector<1x256xf32>
    %c9 = arith.constant 9 : index
    %216 = memref.load %arg1[%c9] : memref<98xf32, #tpu.memory_space<smem>>
    %c58 = arith.constant 58 : index
    %217 = memref.load %arg1[%c58] : memref<98xf32, #tpu.memory_space<smem>>
    %218 = vector.broadcast %216 : f32 to vector<1x256xf32>
    %219 = arith.mulf %218, %214 : vector<1x256xf32>
    %220 = arith.addf %213, %219 : vector<1x256xf32>
    %221 = vector.broadcast %217 : f32 to vector<1x256xf32>
    %222 = arith.mulf %221, %215 : vector<1x256xf32>
    %223 = arith.addf %220, %222 : vector<1x256xf32>
    %c0_79 = arith.constant 0 : index
    %c111 = arith.constant 111 : index
    %224 = vector.load %arg4[%c0_79, %c111] : memref<1x512xf32, #tpu.memory_space<vmem>>, vector<1x256xf32>
    %c0_80 = arith.constant 0 : index
    %c111_81 = arith.constant 111 : index
    %225 = vector.load %arg5[%c0_80, %c111_81] : memref<1x512xf32, #tpu.memory_space<vmem>>, vector<1x256xf32>
    %c16 = arith.constant 16 : index
    %226 = memref.load %arg1[%c16] : memref<98xf32, #tpu.memory_space<smem>>
    %c65 = arith.constant 65 : index
    %227 = memref.load %arg1[%c65] : memref<98xf32, #tpu.memory_space<smem>>
    %228 = vector.broadcast %226 : f32 to vector<1x256xf32>
    %229 = arith.mulf %228, %224 : vector<1x256xf32>
    %230 = arith.addf %223, %229 : vector<1x256xf32>
    %231 = vector.broadcast %227 : f32 to vector<1x256xf32>
    %232 = arith.mulf %231, %225 : vector<1x256xf32>
    %233 = arith.addf %230, %232 : vector<1x256xf32>
    %c0_82 = arith.constant 0 : index
    %c127 = arith.constant 127 : index
    %234 = vector.load %arg4[%c0_82, %c127] : memref<1x512xf32, #tpu.memory_space<vmem>>, vector<1x256xf32>
    %c0_83 = arith.constant 0 : index
    %c127_84 = arith.constant 127 : index
    %235 = vector.load %arg5[%c0_83, %c127_84] : memref<1x512xf32, #tpu.memory_space<vmem>>, vector<1x256xf32>
    %c23 = arith.constant 23 : index
    %236 = memref.load %arg1[%c23] : memref<98xf32, #tpu.memory_space<smem>>
    %c72 = arith.constant 72 : index
    %237 = memref.load %arg1[%c72] : memref<98xf32, #tpu.memory_space<smem>>
    %238 = vector.broadcast %236 : f32 to vector<1x256xf32>
    %239 = arith.mulf %238, %234 : vector<1x256xf32>
    %240 = arith.addf %233, %239 : vector<1x256xf32>
    %241 = vector.broadcast %237 : f32 to vector<1x256xf32>
    %242 = arith.mulf %241, %235 : vector<1x256xf32>
    %243 = arith.addf %240, %242 : vector<1x256xf32>
    %c0_85 = arith.constant 0 : index
    %c143 = arith.constant 143 : index
    %244 = vector.load %arg4[%c0_85, %c143] : memref<1x512xf32, #tpu.memory_space<vmem>>, vector<1x256xf32>
    %c0_86 = arith.constant 0 : index
    %c143_87 = arith.constant 143 : index
    %245 = vector.load %arg5[%c0_86, %c143_87] : memref<1x512xf32, #tpu.memory_space<vmem>>, vector<1x256xf32>
    %c30 = arith.constant 30 : index
    %246 = memref.load %arg1[%c30] : memref<98xf32, #tpu.memory_space<smem>>
    %c79_88 = arith.constant 79 : index
    %247 = memref.load %arg1[%c79_88] : memref<98xf32, #tpu.memory_space<smem>>
    %248 = vector.broadcast %246 : f32 to vector<1x256xf32>
    %249 = arith.mulf %248, %244 : vector<1x256xf32>
    %250 = arith.addf %243, %249 : vector<1x256xf32>
    %251 = vector.broadcast %247 : f32 to vector<1x256xf32>
    %252 = arith.mulf %251, %245 : vector<1x256xf32>
    %253 = arith.addf %250, %252 : vector<1x256xf32>
    %c0_89 = arith.constant 0 : index
    %c159 = arith.constant 159 : index
    %254 = vector.load %arg4[%c0_89, %c159] : memref<1x512xf32, #tpu.memory_space<vmem>>, vector<1x256xf32>
    %c0_90 = arith.constant 0 : index
    %c159_91 = arith.constant 159 : index
    %255 = vector.load %arg5[%c0_90, %c159_91] : memref<1x512xf32, #tpu.memory_space<vmem>>, vector<1x256xf32>
    %c37 = arith.constant 37 : index
    %256 = memref.load %arg1[%c37] : memref<98xf32, #tpu.memory_space<smem>>
    %c86 = arith.constant 86 : index
    %257 = memref.load %arg1[%c86] : memref<98xf32, #tpu.memory_space<smem>>
    %258 = vector.broadcast %256 : f32 to vector<1x256xf32>
    %259 = arith.mulf %258, %254 : vector<1x256xf32>
    %260 = arith.addf %253, %259 : vector<1x256xf32>
    %261 = vector.broadcast %257 : f32 to vector<1x256xf32>
    %262 = arith.mulf %261, %255 : vector<1x256xf32>
    %263 = arith.addf %260, %262 : vector<1x256xf32>
    %c0_92 = arith.constant 0 : index
    %c175 = arith.constant 175 : index
    %264 = vector.load %arg4[%c0_92, %c175] : memref<1x512xf32, #tpu.memory_space<vmem>>, vector<1x256xf32>
    %c0_93 = arith.constant 0 : index
    %c175_94 = arith.constant 175 : index
    %265 = vector.load %arg5[%c0_93, %c175_94] : memref<1x512xf32, #tpu.memory_space<vmem>>, vector<1x256xf32>
    %c44 = arith.constant 44 : index
    %266 = memref.load %arg1[%c44] : memref<98xf32, #tpu.memory_space<smem>>
    %c93_95 = arith.constant 93 : index
    %267 = memref.load %arg1[%c93_95] : memref<98xf32, #tpu.memory_space<smem>>
    %268 = vector.broadcast %266 : f32 to vector<1x256xf32>
    %269 = arith.mulf %268, %264 : vector<1x256xf32>
    %270 = arith.addf %263, %269 : vector<1x256xf32>
    %271 = vector.broadcast %267 : f32 to vector<1x256xf32>
    %272 = arith.mulf %271, %265 : vector<1x256xf32>
    %273 = arith.addf %270, %272 : vector<1x256xf32>
    %cst_96 = arith.constant 0.000000e+00 : f32
    %274 = vector.broadcast %cst_96 : f32 to vector<1x256xf32>
    %275 = arith.select %202, %273, %274 : vector<1x256xi1>, vector<1x256xf32>
    %276 = arith.addf %197, %275 : vector<1x256xf32>
    %c0_i32_97 = arith.constant 0 : i32
    %277 = vector.broadcast %c0_i32_97 : i32 to vector<1x256xi32>
    %278 = arith.cmpi sge, %38, %277 : vector<1x256xi32>
    %c16_i32_98 = arith.constant 16 : i32
    %279 = vector.broadcast %c16_i32_98 : i32 to vector<1x256xi32>
    %280 = arith.cmpi slt, %38, %279 : vector<1x256xi32>
    %281 = arith.andi %278, %280 : vector<1x256xi1>
    %cst_99 = arith.constant 0.000000e+00 : f32
    %282 = vector.broadcast %cst_99 : f32 to vector<1x256xf32>
    %c0_100 = arith.constant 0 : index
    %c80 = arith.constant 80 : index
    %283 = vector.load %arg4[%c0_100, %c80] : memref<1x512xf32, #tpu.memory_space<vmem>>, vector<1x256xf32>
    %c0_101 = arith.constant 0 : index
    %c80_102 = arith.constant 80 : index
    %284 = vector.load %arg5[%c0_101, %c80_102] : memref<1x512xf32, #tpu.memory_space<vmem>>, vector<1x256xf32>
    %c3 = arith.constant 3 : index
    %285 = memref.load %arg1[%c3] : memref<98xf32, #tpu.memory_space<smem>>
    %c52 = arith.constant 52 : index
    %286 = memref.load %arg1[%c52] : memref<98xf32, #tpu.memory_space<smem>>
    %287 = vector.broadcast %285 : f32 to vector<1x256xf32>
    %288 = arith.mulf %287, %283 : vector<1x256xf32>
    %289 = arith.addf %282, %288 : vector<1x256xf32>
    %290 = vector.broadcast %286 : f32 to vector<1x256xf32>
    %291 = arith.mulf %290, %284 : vector<1x256xf32>
    %292 = arith.addf %289, %291 : vector<1x256xf32>
    %c0_103 = arith.constant 0 : index
    %c96 = arith.constant 96 : index
    %293 = vector.load %arg4[%c0_103, %c96] : memref<1x512xf32, #tpu.memory_space<vmem>>, vector<1x256xf32>
    %c0_104 = arith.constant 0 : index
    %c96_105 = arith.constant 96 : index
    %294 = vector.load %arg5[%c0_104, %c96_105] : memref<1x512xf32, #tpu.memory_space<vmem>>, vector<1x256xf32>
    %c10 = arith.constant 10 : index
    %295 = memref.load %arg1[%c10] : memref<98xf32, #tpu.memory_space<smem>>
    %c59 = arith.constant 59 : index
    %296 = memref.load %arg1[%c59] : memref<98xf32, #tpu.memory_space<smem>>
    %297 = vector.broadcast %295 : f32 to vector<1x256xf32>
    %298 = arith.mulf %297, %293 : vector<1x256xf32>
    %299 = arith.addf %292, %298 : vector<1x256xf32>
    %300 = vector.broadcast %296 : f32 to vector<1x256xf32>
    %301 = arith.mulf %300, %294 : vector<1x256xf32>
    %302 = arith.addf %299, %301 : vector<1x256xf32>
    %c0_106 = arith.constant 0 : index
    %c112 = arith.constant 112 : index
    %303 = vector.load %arg4[%c0_106, %c112] : memref<1x512xf32, #tpu.memory_space<vmem>>, vector<1x256xf32>
    %c0_107 = arith.constant 0 : index
    %c112_108 = arith.constant 112 : index
    %304 = vector.load %arg5[%c0_107, %c112_108] : memref<1x512xf32, #tpu.memory_space<vmem>>, vector<1x256xf32>
    %c17 = arith.constant 17 : index
    %305 = memref.load %arg1[%c17] : memref<98xf32, #tpu.memory_space<smem>>
    %c66 = arith.constant 66 : index
    %306 = memref.load %arg1[%c66] : memref<98xf32, #tpu.memory_space<smem>>
    %307 = vector.broadcast %305 : f32 to vector<1x256xf32>
    %308 = arith.mulf %307, %303 : vector<1x256xf32>
    %309 = arith.addf %302, %308 : vector<1x256xf32>
    %310 = vector.broadcast %306 : f32 to vector<1x256xf32>
    %311 = arith.mulf %310, %304 : vector<1x256xf32>
    %312 = arith.addf %309, %311 : vector<1x256xf32>
    %c0_109 = arith.constant 0 : index
    %c128_110 = arith.constant 128 : index
    %313 = vector.load %arg4[%c0_109, %c128_110] : memref<1x512xf32, #tpu.memory_space<vmem>>, vector<1x256xf32>
    %c0_111 = arith.constant 0 : index
    %c128_112 = arith.constant 128 : index
    %314 = vector.load %arg5[%c0_111, %c128_112] : memref<1x512xf32, #tpu.memory_space<vmem>>, vector<1x256xf32>
    %c24 = arith.constant 24 : index
    %315 = memref.load %arg1[%c24] : memref<98xf32, #tpu.memory_space<smem>>
    %c73 = arith.constant 73 : index
    %316 = memref.load %arg1[%c73] : memref<98xf32, #tpu.memory_space<smem>>
    %317 = vector.broadcast %315 : f32 to vector<1x256xf32>
    %318 = arith.mulf %317, %313 : vector<1x256xf32>
    %319 = arith.addf %312, %318 : vector<1x256xf32>
    %320 = vector.broadcast %316 : f32 to vector<1x256xf32>
    %321 = arith.mulf %320, %314 : vector<1x256xf32>
    %322 = arith.addf %319, %321 : vector<1x256xf32>
    %c0_113 = arith.constant 0 : index
    %c144 = arith.constant 144 : index
    %323 = vector.load %arg4[%c0_113, %c144] : memref<1x512xf32, #tpu.memory_space<vmem>>, vector<1x256xf32>
    %c0_114 = arith.constant 0 : index
    %c144_115 = arith.constant 144 : index
    %324 = vector.load %arg5[%c0_114, %c144_115] : memref<1x512xf32, #tpu.memory_space<vmem>>, vector<1x256xf32>
    %c31 = arith.constant 31 : index
    %325 = memref.load %arg1[%c31] : memref<98xf32, #tpu.memory_space<smem>>
    %c80_116 = arith.constant 80 : index
    %326 = memref.load %arg1[%c80_116] : memref<98xf32, #tpu.memory_space<smem>>
    %327 = vector.broadcast %325 : f32 to vector<1x256xf32>
    %328 = arith.mulf %327, %323 : vector<1x256xf32>
    %329 = arith.addf %322, %328 : vector<1x256xf32>
    %330 = vector.broadcast %326 : f32 to vector<1x256xf32>
    %331 = arith.mulf %330, %324 : vector<1x256xf32>
    %332 = arith.addf %329, %331 : vector<1x256xf32>
    %c0_117 = arith.constant 0 : index
    %c160 = arith.constant 160 : index
    %333 = vector.load %arg4[%c0_117, %c160] : memref<1x512xf32, #tpu.memory_space<vmem>>, vector<1x256xf32>
    %c0_118 = arith.constant 0 : index
    %c160_119 = arith.constant 160 : index
    %334 = vector.load %arg5[%c0_118, %c160_119] : memref<1x512xf32, #tpu.memory_space<vmem>>, vector<1x256xf32>
    %c38 = arith.constant 38 : index
    %335 = memref.load %arg1[%c38] : memref<98xf32, #tpu.memory_space<smem>>
    %c87 = arith.constant 87 : index
    %336 = memref.load %arg1[%c87] : memref<98xf32, #tpu.memory_space<smem>>
    %337 = vector.broadcast %335 : f32 to vector<1x256xf32>
    %338 = arith.mulf %337, %333 : vector<1x256xf32>
    %339 = arith.addf %332, %338 : vector<1x256xf32>
    %340 = vector.broadcast %336 : f32 to vector<1x256xf32>
    %341 = arith.mulf %340, %334 : vector<1x256xf32>
    %342 = arith.addf %339, %341 : vector<1x256xf32>
    %c0_120 = arith.constant 0 : index
    %c176 = arith.constant 176 : index
    %343 = vector.load %arg4[%c0_120, %c176] : memref<1x512xf32, #tpu.memory_space<vmem>>, vector<1x256xf32>
    %c0_121 = arith.constant 0 : index
    %c176_122 = arith.constant 176 : index
    %344 = vector.load %arg5[%c0_121, %c176_122] : memref<1x512xf32, #tpu.memory_space<vmem>>, vector<1x256xf32>
    %c45 = arith.constant 45 : index
    %345 = memref.load %arg1[%c45] : memref<98xf32, #tpu.memory_space<smem>>
    %c94_123 = arith.constant 94 : index
    %346 = memref.load %arg1[%c94_123] : memref<98xf32, #tpu.memory_space<smem>>
    %347 = vector.broadcast %345 : f32 to vector<1x256xf32>
    %348 = arith.mulf %347, %343 : vector<1x256xf32>
    %349 = arith.addf %342, %348 : vector<1x256xf32>
    %350 = vector.broadcast %346 : f32 to vector<1x256xf32>
    %351 = arith.mulf %350, %344 : vector<1x256xf32>
    %352 = arith.addf %349, %351 : vector<1x256xf32>
    %cst_124 = arith.constant 0.000000e+00 : f32
    %353 = vector.broadcast %cst_124 : f32 to vector<1x256xf32>
    %354 = arith.select %281, %352, %353 : vector<1x256xi1>, vector<1x256xf32>
    %355 = arith.addf %276, %354 : vector<1x256xf32>
    %c-1_i32 = arith.constant -1 : i32
    %356 = vector.broadcast %c-1_i32 : i32 to vector<1x256xi32>
    %357 = arith.cmpi sge, %38, %356 : vector<1x256xi32>
    %c15_i32 = arith.constant 15 : i32
    %358 = vector.broadcast %c15_i32 : i32 to vector<1x256xi32>
    %359 = arith.cmpi slt, %38, %358 : vector<1x256xi32>
    %360 = arith.andi %357, %359 : vector<1x256xi1>
    %cst_125 = arith.constant 0.000000e+00 : f32
    %361 = vector.broadcast %cst_125 : f32 to vector<1x256xf32>
    %c0_126 = arith.constant 0 : index
    %c81 = arith.constant 81 : index
    %362 = vector.load %arg4[%c0_126, %c81] : memref<1x512xf32, #tpu.memory_space<vmem>>, vector<1x256xf32>
    %c0_127 = arith.constant 0 : index
    %c81_128 = arith.constant 81 : index
    %363 = vector.load %arg5[%c0_127, %c81_128] : memref<1x512xf32, #tpu.memory_space<vmem>>, vector<1x256xf32>
    %c4 = arith.constant 4 : index
    %364 = memref.load %arg1[%c4] : memref<98xf32, #tpu.memory_space<smem>>
    %c53 = arith.constant 53 : index
    %365 = memref.load %arg1[%c53] : memref<98xf32, #tpu.memory_space<smem>>
    %366 = vector.broadcast %364 : f32 to vector<1x256xf32>
    %367 = arith.mulf %366, %362 : vector<1x256xf32>
    %368 = arith.addf %361, %367 : vector<1x256xf32>
    %369 = vector.broadcast %365 : f32 to vector<1x256xf32>
    %370 = arith.mulf %369, %363 : vector<1x256xf32>
    %371 = arith.addf %368, %370 : vector<1x256xf32>
    %c0_129 = arith.constant 0 : index
    %c97 = arith.constant 97 : index
    %372 = vector.load %arg4[%c0_129, %c97] : memref<1x512xf32, #tpu.memory_space<vmem>>, vector<1x256xf32>
    %c0_130 = arith.constant 0 : index
    %c97_131 = arith.constant 97 : index
    %373 = vector.load %arg5[%c0_130, %c97_131] : memref<1x512xf32, #tpu.memory_space<vmem>>, vector<1x256xf32>
    %c11 = arith.constant 11 : index
    %374 = memref.load %arg1[%c11] : memref<98xf32, #tpu.memory_space<smem>>
    %c60 = arith.constant 60 : index
    %375 = memref.load %arg1[%c60] : memref<98xf32, #tpu.memory_space<smem>>
    %376 = vector.broadcast %374 : f32 to vector<1x256xf32>
    %377 = arith.mulf %376, %372 : vector<1x256xf32>
    %378 = arith.addf %371, %377 : vector<1x256xf32>
    %379 = vector.broadcast %375 : f32 to vector<1x256xf32>
    %380 = arith.mulf %379, %373 : vector<1x256xf32>
    %381 = arith.addf %378, %380 : vector<1x256xf32>
    %c0_132 = arith.constant 0 : index
    %c113 = arith.constant 113 : index
    %382 = vector.load %arg4[%c0_132, %c113] : memref<1x512xf32, #tpu.memory_space<vmem>>, vector<1x256xf32>
    %c0_133 = arith.constant 0 : index
    %c113_134 = arith.constant 113 : index
    %383 = vector.load %arg5[%c0_133, %c113_134] : memref<1x512xf32, #tpu.memory_space<vmem>>, vector<1x256xf32>
    %c18 = arith.constant 18 : index
    %384 = memref.load %arg1[%c18] : memref<98xf32, #tpu.memory_space<smem>>
    %c67 = arith.constant 67 : index
    %385 = memref.load %arg1[%c67] : memref<98xf32, #tpu.memory_space<smem>>
    %386 = vector.broadcast %384 : f32 to vector<1x256xf32>
    %387 = arith.mulf %386, %382 : vector<1x256xf32>
    %388 = arith.addf %381, %387 : vector<1x256xf32>
    %389 = vector.broadcast %385 : f32 to vector<1x256xf32>
    %390 = arith.mulf %389, %383 : vector<1x256xf32>
    %391 = arith.addf %388, %390 : vector<1x256xf32>
    %c0_135 = arith.constant 0 : index
    %c129 = arith.constant 129 : index
    %392 = vector.load %arg4[%c0_135, %c129] : memref<1x512xf32, #tpu.memory_space<vmem>>, vector<1x256xf32>
    %c0_136 = arith.constant 0 : index
    %c129_137 = arith.constant 129 : index
    %393 = vector.load %arg5[%c0_136, %c129_137] : memref<1x512xf32, #tpu.memory_space<vmem>>, vector<1x256xf32>
    %c25 = arith.constant 25 : index
    %394 = memref.load %arg1[%c25] : memref<98xf32, #tpu.memory_space<smem>>
    %c74 = arith.constant 74 : index
    %395 = memref.load %arg1[%c74] : memref<98xf32, #tpu.memory_space<smem>>
    %396 = vector.broadcast %394 : f32 to vector<1x256xf32>
    %397 = arith.mulf %396, %392 : vector<1x256xf32>
    %398 = arith.addf %391, %397 : vector<1x256xf32>
    %399 = vector.broadcast %395 : f32 to vector<1x256xf32>
    %400 = arith.mulf %399, %393 : vector<1x256xf32>
    %401 = arith.addf %398, %400 : vector<1x256xf32>
    %c0_138 = arith.constant 0 : index
    %c145 = arith.constant 145 : index
    %402 = vector.load %arg4[%c0_138, %c145] : memref<1x512xf32, #tpu.memory_space<vmem>>, vector<1x256xf32>
    %c0_139 = arith.constant 0 : index
    %c145_140 = arith.constant 145 : index
    %403 = vector.load %arg5[%c0_139, %c145_140] : memref<1x512xf32, #tpu.memory_space<vmem>>, vector<1x256xf32>
    %c32 = arith.constant 32 : index
    %404 = memref.load %arg1[%c32] : memref<98xf32, #tpu.memory_space<smem>>
    %c81_141 = arith.constant 81 : index
    %405 = memref.load %arg1[%c81_141] : memref<98xf32, #tpu.memory_space<smem>>
    %406 = vector.broadcast %404 : f32 to vector<1x256xf32>
    %407 = arith.mulf %406, %402 : vector<1x256xf32>
    %408 = arith.addf %401, %407 : vector<1x256xf32>
    %409 = vector.broadcast %405 : f32 to vector<1x256xf32>
    %410 = arith.mulf %409, %403 : vector<1x256xf32>
    %411 = arith.addf %408, %410 : vector<1x256xf32>
    %c0_142 = arith.constant 0 : index
    %c161 = arith.constant 161 : index
    %412 = vector.load %arg4[%c0_142, %c161] : memref<1x512xf32, #tpu.memory_space<vmem>>, vector<1x256xf32>
    %c0_143 = arith.constant 0 : index
    %c161_144 = arith.constant 161 : index
    %413 = vector.load %arg5[%c0_143, %c161_144] : memref<1x512xf32, #tpu.memory_space<vmem>>, vector<1x256xf32>
    %c39 = arith.constant 39 : index
    %414 = memref.load %arg1[%c39] : memref<98xf32, #tpu.memory_space<smem>>
    %c88 = arith.constant 88 : index
    %415 = memref.load %arg1[%c88] : memref<98xf32, #tpu.memory_space<smem>>
    %416 = vector.broadcast %414 : f32 to vector<1x256xf32>
    %417 = arith.mulf %416, %412 : vector<1x256xf32>
    %418 = arith.addf %411, %417 : vector<1x256xf32>
    %419 = vector.broadcast %415 : f32 to vector<1x256xf32>
    %420 = arith.mulf %419, %413 : vector<1x256xf32>
    %421 = arith.addf %418, %420 : vector<1x256xf32>
    %c0_145 = arith.constant 0 : index
    %c177 = arith.constant 177 : index
    %422 = vector.load %arg4[%c0_145, %c177] : memref<1x512xf32, #tpu.memory_space<vmem>>, vector<1x256xf32>
    %c0_146 = arith.constant 0 : index
    %c177_147 = arith.constant 177 : index
    %423 = vector.load %arg5[%c0_146, %c177_147] : memref<1x512xf32, #tpu.memory_space<vmem>>, vector<1x256xf32>
    %c46 = arith.constant 46 : index
    %424 = memref.load %arg1[%c46] : memref<98xf32, #tpu.memory_space<smem>>
    %c95_148 = arith.constant 95 : index
    %425 = memref.load %arg1[%c95_148] : memref<98xf32, #tpu.memory_space<smem>>
    %426 = vector.broadcast %424 : f32 to vector<1x256xf32>
    %427 = arith.mulf %426, %422 : vector<1x256xf32>
    %428 = arith.addf %421, %427 : vector<1x256xf32>
    %429 = vector.broadcast %425 : f32 to vector<1x256xf32>
    %430 = arith.mulf %429, %423 : vector<1x256xf32>
    %431 = arith.addf %428, %430 : vector<1x256xf32>
    %cst_149 = arith.constant 0.000000e+00 : f32
    %432 = vector.broadcast %cst_149 : f32 to vector<1x256xf32>
    %433 = arith.select %360, %431, %432 : vector<1x256xi1>, vector<1x256xf32>
    %434 = arith.addf %355, %433 : vector<1x256xf32>
    %c-2_i32 = arith.constant -2 : i32
    %435 = vector.broadcast %c-2_i32 : i32 to vector<1x256xi32>
    %436 = arith.cmpi sge, %38, %435 : vector<1x256xi32>
    %c14_i32 = arith.constant 14 : i32
    %437 = vector.broadcast %c14_i32 : i32 to vector<1x256xi32>
    %438 = arith.cmpi slt, %38, %437 : vector<1x256xi32>
    %439 = arith.andi %436, %438 : vector<1x256xi1>
    %cst_150 = arith.constant 0.000000e+00 : f32
    %440 = vector.broadcast %cst_150 : f32 to vector<1x256xf32>
    %c0_151 = arith.constant 0 : index
    %c82 = arith.constant 82 : index
    %441 = vector.load %arg4[%c0_151, %c82] : memref<1x512xf32, #tpu.memory_space<vmem>>, vector<1x256xf32>
    %c0_152 = arith.constant 0 : index
    %c82_153 = arith.constant 82 : index
    %442 = vector.load %arg5[%c0_152, %c82_153] : memref<1x512xf32, #tpu.memory_space<vmem>>, vector<1x256xf32>
    %c5 = arith.constant 5 : index
    %443 = memref.load %arg1[%c5] : memref<98xf32, #tpu.memory_space<smem>>
    %c54 = arith.constant 54 : index
    %444 = memref.load %arg1[%c54] : memref<98xf32, #tpu.memory_space<smem>>
    %445 = vector.broadcast %443 : f32 to vector<1x256xf32>
    %446 = arith.mulf %445, %441 : vector<1x256xf32>
    %447 = arith.addf %440, %446 : vector<1x256xf32>
    %448 = vector.broadcast %444 : f32 to vector<1x256xf32>
    %449 = arith.mulf %448, %442 : vector<1x256xf32>
    %450 = arith.addf %447, %449 : vector<1x256xf32>
    %c0_154 = arith.constant 0 : index
    %c98 = arith.constant 98 : index
    %451 = vector.load %arg4[%c0_154, %c98] : memref<1x512xf32, #tpu.memory_space<vmem>>, vector<1x256xf32>
    %c0_155 = arith.constant 0 : index
    %c98_156 = arith.constant 98 : index
    %452 = vector.load %arg5[%c0_155, %c98_156] : memref<1x512xf32, #tpu.memory_space<vmem>>, vector<1x256xf32>
    %c12 = arith.constant 12 : index
    %453 = memref.load %arg1[%c12] : memref<98xf32, #tpu.memory_space<smem>>
    %c61 = arith.constant 61 : index
    %454 = memref.load %arg1[%c61] : memref<98xf32, #tpu.memory_space<smem>>
    %455 = vector.broadcast %453 : f32 to vector<1x256xf32>
    %456 = arith.mulf %455, %451 : vector<1x256xf32>
    %457 = arith.addf %450, %456 : vector<1x256xf32>
    %458 = vector.broadcast %454 : f32 to vector<1x256xf32>
    %459 = arith.mulf %458, %452 : vector<1x256xf32>
    %460 = arith.addf %457, %459 : vector<1x256xf32>
    %c0_157 = arith.constant 0 : index
    %c114 = arith.constant 114 : index
    %461 = vector.load %arg4[%c0_157, %c114] : memref<1x512xf32, #tpu.memory_space<vmem>>, vector<1x256xf32>
    %c0_158 = arith.constant 0 : index
    %c114_159 = arith.constant 114 : index
    %462 = vector.load %arg5[%c0_158, %c114_159] : memref<1x512xf32, #tpu.memory_space<vmem>>, vector<1x256xf32>
    %c19 = arith.constant 19 : index
    %463 = memref.load %arg1[%c19] : memref<98xf32, #tpu.memory_space<smem>>
    %c68 = arith.constant 68 : index
    %464 = memref.load %arg1[%c68] : memref<98xf32, #tpu.memory_space<smem>>
    %465 = vector.broadcast %463 : f32 to vector<1x256xf32>
    %466 = arith.mulf %465, %461 : vector<1x256xf32>
    %467 = arith.addf %460, %466 : vector<1x256xf32>
    %468 = vector.broadcast %464 : f32 to vector<1x256xf32>
    %469 = arith.mulf %468, %462 : vector<1x256xf32>
    %470 = arith.addf %467, %469 : vector<1x256xf32>
    %c0_160 = arith.constant 0 : index
    %c130 = arith.constant 130 : index
    %471 = vector.load %arg4[%c0_160, %c130] : memref<1x512xf32, #tpu.memory_space<vmem>>, vector<1x256xf32>
    %c0_161 = arith.constant 0 : index
    %c130_162 = arith.constant 130 : index
    %472 = vector.load %arg5[%c0_161, %c130_162] : memref<1x512xf32, #tpu.memory_space<vmem>>, vector<1x256xf32>
    %c26 = arith.constant 26 : index
    %473 = memref.load %arg1[%c26] : memref<98xf32, #tpu.memory_space<smem>>
    %c75 = arith.constant 75 : index
    %474 = memref.load %arg1[%c75] : memref<98xf32, #tpu.memory_space<smem>>
    %475 = vector.broadcast %473 : f32 to vector<1x256xf32>
    %476 = arith.mulf %475, %471 : vector<1x256xf32>
    %477 = arith.addf %470, %476 : vector<1x256xf32>
    %478 = vector.broadcast %474 : f32 to vector<1x256xf32>
    %479 = arith.mulf %478, %472 : vector<1x256xf32>
    %480 = arith.addf %477, %479 : vector<1x256xf32>
    %c0_163 = arith.constant 0 : index
    %c146 = arith.constant 146 : index
    %481 = vector.load %arg4[%c0_163, %c146] : memref<1x512xf32, #tpu.memory_space<vmem>>, vector<1x256xf32>
    %c0_164 = arith.constant 0 : index
    %c146_165 = arith.constant 146 : index
    %482 = vector.load %arg5[%c0_164, %c146_165] : memref<1x512xf32, #tpu.memory_space<vmem>>, vector<1x256xf32>
    %c33 = arith.constant 33 : index
    %483 = memref.load %arg1[%c33] : memref<98xf32, #tpu.memory_space<smem>>
    %c82_166 = arith.constant 82 : index
    %484 = memref.load %arg1[%c82_166] : memref<98xf32, #tpu.memory_space<smem>>
    %485 = vector.broadcast %483 : f32 to vector<1x256xf32>
    %486 = arith.mulf %485, %481 : vector<1x256xf32>
    %487 = arith.addf %480, %486 : vector<1x256xf32>
    %488 = vector.broadcast %484 : f32 to vector<1x256xf32>
    %489 = arith.mulf %488, %482 : vector<1x256xf32>
    %490 = arith.addf %487, %489 : vector<1x256xf32>
    %c0_167 = arith.constant 0 : index
    %c162 = arith.constant 162 : index
    %491 = vector.load %arg4[%c0_167, %c162] : memref<1x512xf32, #tpu.memory_space<vmem>>, vector<1x256xf32>
    %c0_168 = arith.constant 0 : index
    %c162_169 = arith.constant 162 : index
    %492 = vector.load %arg5[%c0_168, %c162_169] : memref<1x512xf32, #tpu.memory_space<vmem>>, vector<1x256xf32>
    %c40 = arith.constant 40 : index
    %493 = memref.load %arg1[%c40] : memref<98xf32, #tpu.memory_space<smem>>
    %c89 = arith.constant 89 : index
    %494 = memref.load %arg1[%c89] : memref<98xf32, #tpu.memory_space<smem>>
    %495 = vector.broadcast %493 : f32 to vector<1x256xf32>
    %496 = arith.mulf %495, %491 : vector<1x256xf32>
    %497 = arith.addf %490, %496 : vector<1x256xf32>
    %498 = vector.broadcast %494 : f32 to vector<1x256xf32>
    %499 = arith.mulf %498, %492 : vector<1x256xf32>
    %500 = arith.addf %497, %499 : vector<1x256xf32>
    %c0_170 = arith.constant 0 : index
    %c178 = arith.constant 178 : index
    %501 = vector.load %arg4[%c0_170, %c178] : memref<1x512xf32, #tpu.memory_space<vmem>>, vector<1x256xf32>
    %c0_171 = arith.constant 0 : index
    %c178_172 = arith.constant 178 : index
    %502 = vector.load %arg5[%c0_171, %c178_172] : memref<1x512xf32, #tpu.memory_space<vmem>>, vector<1x256xf32>
    %c47 = arith.constant 47 : index
    %503 = memref.load %arg1[%c47] : memref<98xf32, #tpu.memory_space<smem>>
    %c96_173 = arith.constant 96 : index
    %504 = memref.load %arg1[%c96_173] : memref<98xf32, #tpu.memory_space<smem>>
    %505 = vector.broadcast %503 : f32 to vector<1x256xf32>
    %506 = arith.mulf %505, %501 : vector<1x256xf32>
    %507 = arith.addf %500, %506 : vector<1x256xf32>
    %508 = vector.broadcast %504 : f32 to vector<1x256xf32>
    %509 = arith.mulf %508, %502 : vector<1x256xf32>
    %510 = arith.addf %507, %509 : vector<1x256xf32>
    %cst_174 = arith.constant 0.000000e+00 : f32
    %511 = vector.broadcast %cst_174 : f32 to vector<1x256xf32>
    %512 = arith.select %439, %510, %511 : vector<1x256xi1>, vector<1x256xf32>
    %513 = arith.addf %434, %512 : vector<1x256xf32>
    %c-3_i32 = arith.constant -3 : i32
    %514 = vector.broadcast %c-3_i32 : i32 to vector<1x256xi32>
    %515 = arith.cmpi sge, %38, %514 : vector<1x256xi32>
    %c13_i32 = arith.constant 13 : i32
    %516 = vector.broadcast %c13_i32 : i32 to vector<1x256xi32>
    %517 = arith.cmpi slt, %38, %516 : vector<1x256xi32>
    %518 = arith.andi %515, %517 : vector<1x256xi1>
    %cst_175 = arith.constant 0.000000e+00 : f32
    %519 = vector.broadcast %cst_175 : f32 to vector<1x256xf32>
    %c0_176 = arith.constant 0 : index
    %c83 = arith.constant 83 : index
    %520 = vector.load %arg4[%c0_176, %c83] : memref<1x512xf32, #tpu.memory_space<vmem>>, vector<1x256xf32>
    %c0_177 = arith.constant 0 : index
    %c83_178 = arith.constant 83 : index
    %521 = vector.load %arg5[%c0_177, %c83_178] : memref<1x512xf32, #tpu.memory_space<vmem>>, vector<1x256xf32>
    %c6 = arith.constant 6 : index
    %522 = memref.load %arg1[%c6] : memref<98xf32, #tpu.memory_space<smem>>
    %c55 = arith.constant 55 : index
    %523 = memref.load %arg1[%c55] : memref<98xf32, #tpu.memory_space<smem>>
    %524 = vector.broadcast %522 : f32 to vector<1x256xf32>
    %525 = arith.mulf %524, %520 : vector<1x256xf32>
    %526 = arith.addf %519, %525 : vector<1x256xf32>
    %527 = vector.broadcast %523 : f32 to vector<1x256xf32>
    %528 = arith.mulf %527, %521 : vector<1x256xf32>
    %529 = arith.addf %526, %528 : vector<1x256xf32>
    %c0_179 = arith.constant 0 : index
    %c99 = arith.constant 99 : index
    %530 = vector.load %arg4[%c0_179, %c99] : memref<1x512xf32, #tpu.memory_space<vmem>>, vector<1x256xf32>
    %c0_180 = arith.constant 0 : index
    %c99_181 = arith.constant 99 : index
    %531 = vector.load %arg5[%c0_180, %c99_181] : memref<1x512xf32, #tpu.memory_space<vmem>>, vector<1x256xf32>
    %c13 = arith.constant 13 : index
    %532 = memref.load %arg1[%c13] : memref<98xf32, #tpu.memory_space<smem>>
    %c62 = arith.constant 62 : index
    %533 = memref.load %arg1[%c62] : memref<98xf32, #tpu.memory_space<smem>>
    %534 = vector.broadcast %532 : f32 to vector<1x256xf32>
    %535 = arith.mulf %534, %530 : vector<1x256xf32>
    %536 = arith.addf %529, %535 : vector<1x256xf32>
    %537 = vector.broadcast %533 : f32 to vector<1x256xf32>
    %538 = arith.mulf %537, %531 : vector<1x256xf32>
    %539 = arith.addf %536, %538 : vector<1x256xf32>
    %c0_182 = arith.constant 0 : index
    %c115 = arith.constant 115 : index
    %540 = vector.load %arg4[%c0_182, %c115] : memref<1x512xf32, #tpu.memory_space<vmem>>, vector<1x256xf32>
    %c0_183 = arith.constant 0 : index
    %c115_184 = arith.constant 115 : index
    %541 = vector.load %arg5[%c0_183, %c115_184] : memref<1x512xf32, #tpu.memory_space<vmem>>, vector<1x256xf32>
    %c20 = arith.constant 20 : index
    %542 = memref.load %arg1[%c20] : memref<98xf32, #tpu.memory_space<smem>>
    %c69 = arith.constant 69 : index
    %543 = memref.load %arg1[%c69] : memref<98xf32, #tpu.memory_space<smem>>
    %544 = vector.broadcast %542 : f32 to vector<1x256xf32>
    %545 = arith.mulf %544, %540 : vector<1x256xf32>
    %546 = arith.addf %539, %545 : vector<1x256xf32>
    %547 = vector.broadcast %543 : f32 to vector<1x256xf32>
    %548 = arith.mulf %547, %541 : vector<1x256xf32>
    %549 = arith.addf %546, %548 : vector<1x256xf32>
    %c0_185 = arith.constant 0 : index
    %c131 = arith.constant 131 : index
    %550 = vector.load %arg4[%c0_185, %c131] : memref<1x512xf32, #tpu.memory_space<vmem>>, vector<1x256xf32>
    %c0_186 = arith.constant 0 : index
    %c131_187 = arith.constant 131 : index
    %551 = vector.load %arg5[%c0_186, %c131_187] : memref<1x512xf32, #tpu.memory_space<vmem>>, vector<1x256xf32>
    %c27 = arith.constant 27 : index
    %552 = memref.load %arg1[%c27] : memref<98xf32, #tpu.memory_space<smem>>
    %c76 = arith.constant 76 : index
    %553 = memref.load %arg1[%c76] : memref<98xf32, #tpu.memory_space<smem>>
    %554 = vector.broadcast %552 : f32 to vector<1x256xf32>
    %555 = arith.mulf %554, %550 : vector<1x256xf32>
    %556 = arith.addf %549, %555 : vector<1x256xf32>
    %557 = vector.broadcast %553 : f32 to vector<1x256xf32>
    %558 = arith.mulf %557, %551 : vector<1x256xf32>
    %559 = arith.addf %556, %558 : vector<1x256xf32>
    %c0_188 = arith.constant 0 : index
    %c147 = arith.constant 147 : index
    %560 = vector.load %arg4[%c0_188, %c147] : memref<1x512xf32, #tpu.memory_space<vmem>>, vector<1x256xf32>
    %c0_189 = arith.constant 0 : index
    %c147_190 = arith.constant 147 : index
    %561 = vector.load %arg5[%c0_189, %c147_190] : memref<1x512xf32, #tpu.memory_space<vmem>>, vector<1x256xf32>
    %c34 = arith.constant 34 : index
    %562 = memref.load %arg1[%c34] : memref<98xf32, #tpu.memory_space<smem>>
    %c83_191 = arith.constant 83 : index
    %563 = memref.load %arg1[%c83_191] : memref<98xf32, #tpu.memory_space<smem>>
    %564 = vector.broadcast %562 : f32 to vector<1x256xf32>
    %565 = arith.mulf %564, %560 : vector<1x256xf32>
    %566 = arith.addf %559, %565 : vector<1x256xf32>
    %567 = vector.broadcast %563 : f32 to vector<1x256xf32>
    %568 = arith.mulf %567, %561 : vector<1x256xf32>
    %569 = arith.addf %566, %568 : vector<1x256xf32>
    %c0_192 = arith.constant 0 : index
    %c163 = arith.constant 163 : index
    %570 = vector.load %arg4[%c0_192, %c163] : memref<1x512xf32, #tpu.memory_space<vmem>>, vector<1x256xf32>
    %c0_193 = arith.constant 0 : index
    %c163_194 = arith.constant 163 : index
    %571 = vector.load %arg5[%c0_193, %c163_194] : memref<1x512xf32, #tpu.memory_space<vmem>>, vector<1x256xf32>
    %c41 = arith.constant 41 : index
    %572 = memref.load %arg1[%c41] : memref<98xf32, #tpu.memory_space<smem>>
    %c90 = arith.constant 90 : index
    %573 = memref.load %arg1[%c90] : memref<98xf32, #tpu.memory_space<smem>>
    %574 = vector.broadcast %572 : f32 to vector<1x256xf32>
    %575 = arith.mulf %574, %570 : vector<1x256xf32>
    %576 = arith.addf %569, %575 : vector<1x256xf32>
    %577 = vector.broadcast %573 : f32 to vector<1x256xf32>
    %578 = arith.mulf %577, %571 : vector<1x256xf32>
    %579 = arith.addf %576, %578 : vector<1x256xf32>
    %c0_195 = arith.constant 0 : index
    %c179 = arith.constant 179 : index
    %580 = vector.load %arg4[%c0_195, %c179] : memref<1x512xf32, #tpu.memory_space<vmem>>, vector<1x256xf32>
    %c0_196 = arith.constant 0 : index
    %c179_197 = arith.constant 179 : index
    %581 = vector.load %arg5[%c0_196, %c179_197] : memref<1x512xf32, #tpu.memory_space<vmem>>, vector<1x256xf32>
    %c48 = arith.constant 48 : index
    %582 = memref.load %arg1[%c48] : memref<98xf32, #tpu.memory_space<smem>>
    %c97_198 = arith.constant 97 : index
    %583 = memref.load %arg1[%c97_198] : memref<98xf32, #tpu.memory_space<smem>>
    %584 = vector.broadcast %582 : f32 to vector<1x256xf32>
    %585 = arith.mulf %584, %580 : vector<1x256xf32>
    %586 = arith.addf %579, %585 : vector<1x256xf32>
    %587 = vector.broadcast %583 : f32 to vector<1x256xf32>
    %588 = arith.mulf %587, %581 : vector<1x256xf32>
    %589 = arith.addf %586, %588 : vector<1x256xf32>
    %cst_199 = arith.constant 0.000000e+00 : f32
    %590 = vector.broadcast %cst_199 : f32 to vector<1x256xf32>
    %591 = arith.select %518, %589, %590 : vector<1x256xi1>, vector<1x256xf32>
    %592 = arith.addf %513, %591 : vector<1x256xf32>
    %593 = arith.negf %592 : vector<1x256xf32>
    %594 = math.exp %593 : vector<1x256xf32>
    %cst_200 = arith.constant 1.000000e+00 : f32
    %595 = vector.broadcast %cst_200 : f32 to vector<1x256xf32>
    %596 = arith.addf %595, %594 : vector<1x256xf32>
    %597 = arith.divf %595, %596 : vector<1x256xf32>
    %598 = vector.shape_cast %597 : vector<1x256xf32> to vector<1x256xf32>
    %599 = vector.broadcast %598 : vector<1x256xf32> to vector<4x256xf32>
    %c0_i32_201 = arith.constant 0 : i32
    %c4_i32_202 = arith.constant 4 : i32
    %600 = arith.muli %c0_i32_201, %c4_i32_202 : i32
    %601 = tpu.assume_multiple %600, 4 : i32
    %c0_203 = arith.constant 0 : index
    %602 = arith.index_cast %601 : i32 to index
    %c0_204 = arith.constant 0 : index
    %603 = vector.load %arg2[%c0_203, %602, %c0_204] : memref<1x4x256xf32, #tpu.memory_space<vmem>>, vector<1x4x256xf32>
    %604 = vector.shape_cast %603 : vector<1x4x256xf32> to vector<4x256xf32>
    %605 = arith.mulf %604, %599 : vector<4x256xf32>
    %cst_205 = arith.constant 0.000000e+00 : f32
    %606 = vector.broadcast %cst_205 : f32 to vector<4x256xf32>
    %607 = arith.maximumf %605, %606 : vector<4x256xf32>
    %c0_206 = arith.constant 0 : index
    %608 = arith.index_cast %601 : i32 to index
    %c0_207 = arith.constant 0 : index
    %609 = vector.load %arg3[%c0_206, %608, %c0_207] : memref<1x4x256xf32, #tpu.memory_space<vmem>>, vector<1x4x256xf32>
    %610 = vector.shape_cast %609 : vector<1x4x256xf32> to vector<4x256xf32>
    %611 = vector.shape_cast %607 : vector<4x256xf32> to vector<1x4x256xf32>
    tpu.vector_store %arg3[%c0_206, %608, %c0_207], %611 {strides = array<i32>} : memref<1x4x256xf32, #tpu.memory_space<vmem>>, vector<1x4x256xf32>,
    %c1_i32_208 = arith.constant 1 : i32
    return
  }
  func.func @transform_0(%arg0: i32) -> i32 {
    %c0_i32 = arith.constant 0 : i32
    %c0_i32_0 = arith.constant 0 : i32
    return %c0_i32 : i32
  }
  func.func @transform_1(%arg0: i32) -> (i32, i32, i32) {
    %c0_i32 = arith.constant 0 : i32
    %c0_i32_0 = arith.constant 0 : i32
    %c0_i32_1 = arith.constant 0 : i32
    return %arg0, %c0_i32, %c0_i32_0 : i32, i32, i32
  }
  func.func @transform_2(%arg0: i32) -> (i32, i32, i32) {
    %c0_i32 = arith.constant 0 : i32
    %c0_i32_0 = arith.constant 0 : i32
    %c0_i32_1 = arith.constant 0 : i32
    return %arg0, %c0_i32, %c0_i32_0 : i32, i32, i32
  }
}

</mosaic_0001>

<bundles_post_ra>
// kernel: tpu_custom_call.1
= control target key start
LH: loop header
LB: loop body
LE: loop exit
PB: predicated region body
PF: predicated region fallthrough
CT: control target
= control target key end

     0   :  { %7 = vsyncpa [#allocation7], 0  ;;  %s2735_s0 = inlined_call_operand.hbm [shape: f32[98], index: 0, kind: input, shape index: {}]   ;;  %s2736_s1 = inlined_call_operand.hbm [shape: f32[2,4,256], index: 1, kind: input, shape index: {}]   ;;  %s2737_s2 = inlined_call_operand.hbm [shape: f32[2,4,256], index: 2, kind: output, shape index: {}]  }
   0x1   :  { %8 = vsyncpa [#allocation5], 0 }
   0x2   :  { %10 = vsyncpa [#allocation5 + $0x1], 0 }
   0x3   :  { %11 = vsyncpa [#allocation6], 0 }
   0x4   :  { %13 = vsyncpa [#allocation6 + $0x1], 0  ;;  %s1903_s9 = smov 0   ;;  %s1905_s10 = smov 0  }
   0x5   :  { %s1907_s11 = smov 0   ;;  %s1909_s12 = smov 0  }
   0x6 LB: > { %s1924_s13 = sadd.s32 4294967295, %s1869_s12   ;;  %s1559_s14 = sadd.s32 4294967294, %s1869_s12   ;;  %s1869_s12 = sphi %s1909_s12, %s2769_s12   ;;  %s1865_s11 = sphi %s1907_s11, %s2768_s11   ;;  %s1861_s10 = sphi %s1905_s10, %s2767_s10   ;;  %s1857_s9 = sphi %s1903_s9, %s2766_s9  }
   0x7   : > { %p60_p0 = scmp.ne.s32.totalorder %s1861_s10, %s1857_s9  ;;  %p2738_p1 = scmp.eq.s32.totalorder %s1924_s13, 0 }
   0x8   : > { %p90_p3 = scmp.eq.s32.totalorder %s1559_s14, 1  ;;  %p1560_p5 = scmp.ge.s32.totalorder %s1869_s12, 1 }
   0x9   : > { %p1933_p4 = por %p2738_p1, %p60_p0  ;;  %p97_p7 = scmp.lt.s32.totalorder %s1869_s12, 3 }
   0xa   : > { %p1938_p6 = por %p90_p3, %p60_p0  ;;  %s1949_s18 = sadd.s32 1, %s1869_s12  }
   0xb   : > { %s2748_s15 = scalar_select %p1933_p4, 1, 0 }
   0xc   : > { %s2749_s16 = scalar_select %p1938_p6, 1, 0 }
   0xd   : > { %p1943_p8 = pnand %p1560_p5, %p97_p7  ;;  %s44_s19 = ssub.s32 %s1869_s12, %s1949_s18 }
   0xe   : > { %s47_s20 = sadd.s32 1, %s1865_s11  ;;  %p1962_p12 = scmp.eq.s32.totalorder %s44_s19, 0 }
   0xf   : > { %p1684_p10 = pneg %p1943_p8  ;;  %p54_p13 = scmp.ne.s32.totalorder %s1865_s11, %s1861_s10 }
  0x10   : > { %p55_p0 = scmp.eq.s32.totalorder %s1869_s12, 0  ;;  %p1697_p3 = scmp.lt.s32.totalorder %s1869_s12, 2 }
  0x11   : > { %p1958_p11 = pnand %p1684_p10, %p2738_p1  ;;  %s1756_s25 = scalar_lea.hbm %s2735_s0, 16 }
  0x12   : > { %p1757_p5 = scmp.ne.s32.totalorder %s2735_s0, %s1756_s25  ;;  %p1763_p1 = scmp.lt.u32.totalorder %s1756_s25, %s2735_s0 }
  0x13   : > { %p1758_p7 = pneg %p1958_p11 }
  0x15   : > { %p1759_p10 = pnand %p1758_p7, %p1757_p5 }
  0x17   : > { %p1760_p9 = pneg %p1759_p10 }
  0x19   : > { %p1765_p2 = pnand %p1763_p1, %p1760_p9 }
  0x1b   : > { %1768 = shalt.err (!%p1765_p2)
}
  0x1c   : > { %s1871_s30 = smov [#allocation4]   ;;  %p56_p1 = por %p55_p0, %p54_p13 }
  0x1d   : > { %1687 = dma.hbm_to_smem (!%p1958_p11), %s2735_s0, 16, %s1871_s30, [#allocation7]  }
  0x1e   : > { %s1989_s5 = scalar_select %p1962_p12, %s1865_s11, %s47_s20  }
  0x1f   : > { %p2753_p2 = scmp.eq.s32.totalorder %s1924_s13, 1  ;;  %s119_s7 = sand.u32 1, %s1865_s11  }
  0x20   : > { %s1674_s8 = sshll.u32 %s1869_s12, 7  ;;  %s1563_s14 = sshll.u32 %s119_s7, 3 }
  0x21   : > { %p2001_p9 = por %p2753_p2, %p54_p13  ;;  %s2010_s23 = scalar_lea.hbm %s2736_s1, %s1674_s8 }
  0x22   : > { %s123_s20 = scalar_lea.vmem [#allocation8], %s1563_s14  ;;  %p2014_p11 = pnand %p1697_p3, %p56_p1 }
  0x23   : > { %s2754_s6 = scalar_select %p2001_p9, 1, 0 }
  0x24   : > { %s131_s22 = sshll.u32 %s123_s20, 4  ;;  %s120_s25 = scalar_lea.sflag [#allocation5], %s119_s7  ;;  %s2018_s22 = int_to_ptr.vmem [resolvable:$true] %s131_s22 }
  0x25   : > { %s1769_s26 = scalar_lea.hbm %s2010_s23, 128  ;;  %p1771_p13 = pneg %p2014_p11 }
  0x26   : > { %p1770_p12 = scmp.ne.s32.totalorder %s2010_s23, %s1769_s26  ;;  %s1774_s29 = scalar_lea.hbm %s2736_s1, 256 }
  0x27   : > { %p1775_p3 = scmp.lt.u32.totalorder %s2010_s23, %s2736_s1  ;;  %p1776_p7 = scmp.lt.u32.totalorder %s1774_s29, %s1769_s26 }
  0x28   : > { %p1772_p0 = pnand %p1771_p13, %p1770_p12  ;;  %p1778_p1 = scmp.lt.u32.totalorder %s1769_s26, %s2010_s23 }
  0x29   : > { %p1777_p10 = por %p1776_p7, %p1775_p3 }
  0x2a   : > { %p1773_p5 = pneg %p1772_p0 }
  0x2b   : > { %p1779_p2 = por %p1778_p1, %p1777_p10 }
  0x2d   : > { %p1780_p6 = pnand %p1779_p2, %p1773_p5 }
  0x2f   : > { %1783 = shalt.err (!%p1780_p6)
}
  0x30   : > { %s1784_s4 = scalar_lea.vmem %s2018_s22, 128  ;;  %s1872_s7 = smov [#allocation8]  }
  0x31   : > { %p1785_p12 = scmp.ne.s32.totalorder %s2018_s22, %s1784_s4  ;;  %s1789_s8 = sshll.u32 %s1872_s7, 4  ;;  %s1790_s8 = int_to_ptr.vmem [resolvable:$false] %s1789_s8 }
  0x32   : > { %s1791_s14 = scalar_lea.vmem %s1790_s8, 256  ;;  %p1792_p4 = scmp.lt.s32.totalorder %s2018_s22, %s1790_s8 }
  0x33   : > { %p1787_p0 = pnand %p1785_p12, %p1771_p13  ;;  %p1793_p3 = scmp.lt.s32.totalorder %s1791_s14, %s1784_s4 }
  0x35   : > { %p1788_p9 = pneg %p1787_p0  ;;  %p1794_p7 = por %p1793_p3, %p1792_p4 }
  0x37   : > { %p1795_p10 = pnand %p1794_p7, %p1788_p9 }
  0x39   : > { %1798 = shalt.err (!%p1795_p10)
}
  0x3a   : > { %1691 = dma.hbm_to_vmem [thread:$0]  (!%p2014_p11), %s2010_s23, 128, %s2018_s22, %s120_s25  }
  0x3b   : > { %140 = sbr.rel (%p1943_p8) target bundleno = 567 (0x237), region = 28  ;;  %p2756_p6 = scmp.eq.s32.totalorder (!%p1943_p8), %s1924_s13, 0 }
  0x42   : > { %1844 = dma.done.wait (%p2756_p6), [#allocation7], 16   ;;  %p2757_p13 = pmov %p2756_p6 }
  0x43   : > { %s2052_s19 = sand.u32 1, %s1861_s10   ;;  %p2758_p4 = scmp.ne.s32.totalorder %s2748_s15, 0 }
  0x44   : > { %1846 = vsyncadd (%p2757_p13), [#allocation7], 4294967280  ;;  %s2741_s21 = sshll.u32 %s2052_s19, 3  ;;  %s147_s20 = scalar_lea.sflag [#allocation5], %s2052_s19 }
  0x45   : > { %s2058_s23 = scalar_lea.vmem [#allocation8], %s2741_s21 }
  0x46   : > { %1848 = dma.done.wait (%p2758_p4), %s147_s20, 128  }
  0x47   : > { %1850 = vsyncadd (%p2758_p4), %s147_s20, 4294967168 }
  0x48   : > { %155 = sfence }
  0x49   : > { %v175_v0 = vld [vmem:[%s2058_s23] sm:$0xff]  ;;  %vm179_vm0 = vcmask 1043456   ;;  %v210_v1 = vlaneseq  ;;  %v1873_v8 = vmov 0.0   ;;  %v1874_v14 = vmov 1966171168   ;;  %s1574_s15 = sld [smem:[#allocation4 + $0x3f]] }
  0x4a   : > { %v177_v2 = vcombine.high %v175_v0, %v175_v0  ;;  %v180_v3 = vsel %vm179_vm0, %v175_v0, 0.0  ;;  %v196_v4 = vsel %vm179_vm0, %v175_v0, -inf  ;;  %v224_v15 = vunpack.c.l.s4 %v1874_v14  ;;  %s1572_s17 = sld [smem:[#allocation4 + $0x38]]  ;;  %s1576_s22 = sld [smem:[#allocation4 + $0x46]] }
  0x4b   : > { %v181_v5 = vrot.slane %v180_v3, 4  ;;  %v197_v6 = vrot.slane %v196_v4, 4  ;;  %vm212_vm1 = vcmp.lt.s32.totalorder %v210_v1, 128  ;;  %v2067_v25 = vshrl.u32 %v210_v1, 7  ;;  %s1600_s24 = sld [smem:[#allocation4 + $0x3a]]  ;;  %s1578_s25 = sld [smem:[#allocation4 + $0x4d]] }
  0x4c   : > { %v203_v7 = vsel %vm179_vm0, %v177_v2, -inf  ;;  %216 = vst.msk [vmem:[#allocation3] sm:$0x1] %vm212_vm1, %v1873_v8  ;;  %v187_v9 = vsel %vm179_vm0, %v177_v2, 0.0  ;;  %214 = vst.msk [vmem:[#allocation2] sm:$0x1] %vm212_vm1, %v1873_v8  ;;  %v225_v24 = vunpack.c.0.s8 %v224_v15 }
  0x4d   : > { %215 = vst.msk [vmem:[#allocation2 + $0x3] sm:$0x1] %vm212_vm1, %v1873_v8  ;;  %217 = vst.msk [vmem:[#allocation3 + $0x3] sm:$0x1] %vm212_vm1, %v1873_v8  ;;  %v182_v10 = vadd.f32 %v181_v5, %v180_v3  ;;  %v198_v11 = vmax.f32 %v196_v4, %v197_v6  ;;  %v204_v12 = vrot.slane %v203_v7, 4  ;;  %v188_v13 = vrot.slane %v187_v9, 4 }
  0x4e   : > { %v228_v36 = vsub.s32 %v225_v24, %v2067_v25  ;;  %vm238_vm2 = vcmp.lt.s32.totalorder %v210_v1, 256  ;;  %s1588_s26 = sld [smem:[#allocation4 + $0x40]]  ;;  %s1586_s27 = sld [smem:[#allocation4 + $0x39]]  ;;  %vm311_vm3 = vcmask 916480   ;;  %vm332_vm4 = vcmask 785408  }
  0x4f   : > { %v183_v16 = vrot.slane %v182_v10, 2  ;;  %v199_v17 = vrot.slane %v198_v11, 2  ;;  %v205_v18 = vmax.f32 %v203_v7, %v204_v12  ;;  %v189_v19 = vadd.f32 %v188_v13, %v187_v9  ;;  %s1571_s28 = sld [smem:[#allocation4 + $0x7]]  ;;  %s2746_s29 = smov 96  }
  0x50   : > { %v336_v45 = vstv %s1574_s15  ;;  %v315_v46 = vstv %s1572_s17  ;;  %v357_v48 = vstv %s1576_s22  ;;  %s1876_s30 = smov 112   ;;  %s1614_s3 = sld [smem:[#allocation4 + $0x3b]]  ;;  %vm353_vm5 = vcmask 654336  }
  0x51   : > { %v184_v20 = vadd.f32 %v183_v16, %v182_v10  ;;  %v200_v21 = vmax.f32 %v198_v11, %v199_v17  ;;  %v206_v22 = vrot.slane %v205_v18, 2  ;;  %v190_v23 = vrot.slane %v189_v19, 2  ;;  %s1575_s4 = sld [smem:[#allocation4 + $0x15]]  ;;  %s2744_s7 = smov 80  }
  0x52   : > { %v646_v49 = vstv %s1600_s24  ;;  %v380_v55 = vstv %s1578_s25  ;;  %s1573_s8 = sld [smem:[#allocation4 + $0xe]]  ;;  %s1577_s14 = sld [smem:[#allocation4 + $0x1c]]  ;;  %vm376_vm6 = vcmask 523264   ;;  %vm397_vm7 = vcmask 392192  }
  0x53   : > { %v185_v26 = vrot.slane %v184_v20, 1  ;;  %v201_v27 = vrot.slane %v200_v21, 1  ;;  %v207_v28 = vmax.f32 %v205_v18, %v206_v22  ;;  %v191_v29 = vadd.f32 %v190_v23, %v189_v19  ;;  %s2742_s20 = smov 64   ;;  %s1587_s15 = sld [smem:[#allocation4 + $0xf]] }
  0x54   : > { %v504_v56 = vstv %s1588_s26  ;;  %v484_v59 = vstv %s1586_s27  ;;  %s1585_s17 = sld [smem:[#allocation4 + $0x8]]  ;;  %s2097_s24 = sld [smem:[#allocation4 + $0x31]]  ;;  %vm418_vm8 = vcmask 261120   ;;  %vm612_vm9 = vcmask 408576  }
  0x55   : > { %v186_v30 = vadd.f32 %v185_v26, %v184_v20  ;;  %v202_v31 = vmax.f32 %v200_v21, %v201_v27  ;;  %v208_v32 = vrot.slane %v207_v28, 1  ;;  %v192_v33 = vrot.slane %v191_v29, 1  ;;  %s2091_s22 = sld [smem:[#allocation4]]  ;;  %s2101_s25 = sld [smem:[#allocation4 + $0xa]] }
  0x56   : > { %v305_v61 = vstv %s1571_s28  ;;  %v808_v0 = vstv %s1614_s3  ;;  %s2103_s26 = sld [smem:[#allocation4 + $0x9]]  ;;  %s2111_s28 = sld [smem:[#allocation4 + $0x32]]  ;;  %vm450_vm10 = vcmask 416768   ;;  %vm774_vm11 = vcmask 400384  }
  0x57   : > { %v209_v34 = vmax.f32 %v207_v28, %v208_v32  ;;  %v218_v35 = vmul.f32 0.25, %v186_v30  ;;  %v193_v37 = vadd.f32 %v192_v33, %v191_v29  ;;  %v347_v2 = vstv %s1575_s4  ;;  %s2109_s27 = sld [smem:[#allocation4 + $0x1]]  ;;  %s2113_s3 = sld [smem:[#allocation4 + $0x10]] }
  0x58   : > { %v326_v5 = vstv %s1573_s8  ;;  %v370_v7 = vstv %s1577_s14  ;;  %s2115_s4 = sld [smem:[#allocation4 + $0xb]]  ;;  %s2119_s14 = sld [smem:[#allocation4 + $0x34]] }
  0x59   : > { %v243_v38 = vcombine.low %v202_v31, %v209_v34  ;;  %v219_v39 = vmul.f32 0.25, %v193_v37  ;;  %v495_v10 = vstv %s1587_s15  ;;  %s2117_s8 = sld [smem:[#allocation4 + $0x3]]  ;;  %s2122_s21 = sld [smem:[#allocation4 + $0x2]] }
  0x5a   : > { %v475_v11 = vstv %s1585_s17  ;;  %v300_v15 = vstv %s2097_s24  ;;  %s2130_s15 = sld [smem:[#allocation4 + $0x33]]  ;;  %s2134_s17 = sld [smem:[#allocation4 + $0x41]] }
  0x5b   : > { %v250_v40 = vrot.slane %v243_v38, %v228_v36  ;;  %v222_v41 = vcombine.low %v218_v35, %v219_v39  ;;  %v297_v12 = vstv %s2091_s22  ;;  %v799_v17 = vstv %s2101_s25  ;;  %s2136_s22 = sld [smem:[#allocation4 + $0x16]]  ;;  %s2141_s24 = sld [smem:[#allocation4 + $0x35]] }
  0x5c   : > { %v637_v18 = vstv %s2103_s26  ;;  %v470_v24 = vstv %s2111_s28  ;;  %s2153_s25 = sld [smem:[#allocation4 + $0xc]]  ;;  %s2180_s28 = sld [smem:[#allocation4 + $0x11]] }
  0x5d   : > { %v257_v42 = vrot.slane %v250_v40, %v228_v36  ;;  %v229_v43 = vrot.slane %v222_v41, %v228_v36  ;;  %v467_v23 = vstv %s2109_s27  ;;  %v657_v26 = vstv %s2113_s3  ;;  %s2155_s26 = sld [smem:[#allocation4 + $0x3c]]  ;;  %s2178_s27 = sld [smem:[#allocation4 + $0x47]] }
  0x5e   : > { %v962_v27 = vstv %s2115_s4  ;;  %v794_v31 = vstv %s2119_s14  ;;  %s1654_s3 = sld [smem:[#allocation4 + $0x37]]  ;;  %s2759_s4 = smov 96  }
  0x5f   : > { %259 = vst.msk [vmem:[#allocation3 + $0x1] sm:$0x3] %vm238_vm2, %v257_v42  ;;  %v236_v44 = vrot.slane %v229_v43, %v228_v36  ;;  %v791_v30 = vstv %s2117_s8  ;;  %v629_v35 = vstv %s2122_s21  ;;  %s1653_s21 = sld [smem:[#allocation4 + $0x6]]  ;;  %s2199_s8 = sld [smem:[#allocation4 + $0x17]] }
  0x60   : > { %v632_v39 = vstv %s2130_s15  ;;  %v666_v40 = vstv %s2134_s17  ;;  %s2760_s14 = smov 80   ;;  %s1655_s15 = sld [smem:[#allocation4 + $0xd]] }
  0x61   : > { %240 = vst.msk [vmem:[#allocation2 + $0x1] sm:$0x3] %vm238_vm2, %v236_v44  ;;  %v515_v41 = vstv %s2136_s22  ;;  %s1642_s17 = sld [smem:[#allocation4 + $0x3d]]  ;;  %s1630_s22 = sld [smem:[#allocation4 + $0x43]]  ;;  %vm1099_vm2 = vcmask 384000  }
  0x62   : > { %p2763_p9 = scmp.ne.s32.totalorder %s2754_s6, 0 }
  0x66   : > { %v2071_v47 = vld [vmem:[#allocation3] sm:$0x7] }
  0x67   : > { %v337_v50 = vmul.f32 %v336_v45, %v2071_v47  ;;  %v316_v51 = vmul.f32 %v315_v46, %v2071_v47  ;;  %v358_v52 = vmul.f32 %v357_v48, %v2071_v47  ;;  %v647_v53 = vmul.f32 %v646_v49, %v2071_v47  ;;  %v2079_v54 = vld [vmem:[#allocation3 + $0x1] sm:$0x7] }
  0x68   : > { %v381_v57 = vmul.f32 %v380_v55, %v2079_v54  ;;  %v505_v58 = vmul.f32 %v504_v56, %v2071_v47  ;;  %v2085_v60 = vld [vmem:[#allocation2] sm:$0x7]  ;;  %v485_v62 = vmul.f32 %v484_v59, %v2071_v47  ;;  %v809_v3 = vmul.f32 %v808_v0, %v2071_v47 }
  0x69   : > { %339 = vrot.lane.b32.xlu1 %v337_v50, %s2746_s29  ;;  %318 = vrot.lane.b32.xlu0 %v316_v51, %s1876_s30  ;;  %v306_v63 = vmul.f32 %v305_v61, %v2085_v60  ;;  %v348_v4 = vmul.f32 %v347_v2, %v2085_v60  ;;  %v2099_v6 = vld [vmem:[#allocation2 + $0x1] sm:$0x7]  ;;  %v327_v8 = vmul.f32 %v326_v5, %v2085_v60  ;;  %v957_v45 = vstv %s2141_s24  ;;  %s1604_s24 = sld [smem:[#allocation4 + $0x48]] }
  0x6a   : > { %v371_v9 = vmul.f32 %v370_v7, %v2099_v6  ;;  %v496_v13 = vmul.f32 %v495_v10, %v2085_v60  ;;  %v476_v14 = vmul.f32 %v475_v11, %v2085_v60  ;;  %v298_v16 = vmul.f32 %v297_v12, %v2085_v60 }
  0x6b   : > { %v301_v19 = vmul.f32 %v300_v15, %v2071_v47  ;;  %v800_v21 = vmul.f32 %v799_v17, %v2085_v60  ;;  %v638_v22 = vmul.f32 %v637_v18, %v2085_v60  ;;  %v468_v28 = vmul.f32 %v467_v23, %v2085_v60 }
  0x6c   : > { %v471_v29 = vmul.f32 %v470_v24, %v2071_v47  ;;  %v792_v33 = vmul.f32 %v791_v30, %v2085_v60  ;;  %v795_v34 = vmul.f32 %v794_v31, %v2071_v47  ;;  %v658_v36 = vmul.f32 %v657_v26, %v2085_v60 }
  0x6d   : > { %360 = vrot.lane.b32.xlu1 %v358_v52, %s2744_s7  ;;  %649 = vrot.lane.b32.xlu0 %v647_v53, %s1876_s30  ;;  %v2143_v20 = vadd.f32 %v301_v19, %v298_v16  ;;  %v963_v37 = vmul.f32 %v962_v27, %v2085_v60  ;;  %v630_v38 = vmul.f32 %v629_v35, %v2085_v60  ;;  %v1124_v52 = vstv %s2153_s25  ;;  %s1656_s25 = sld [smem:[#allocation4 + $0x3e]]  ;;  %v837_v35 = vld [vmem:[#allocation2 + $0x1] sm:$0x3] }
  0x6e   : > { %v2165_v32 = vadd.f32 %v471_v29, %v468_v28  ;;  %v2182_v42 = vadd.f32 %v795_v34, %v792_v33  ;;  %v633_v43 = vmul.f32 %v632_v39, %v2071_v47  ;;  %v958_v49 = vmul.f32 %v957_v45, %v2071_v47 }
  0x6f   : > { %v667_v50 = vmul.f32 %v666_v40, %v2071_v47  ;;  %v516_v51 = vmul.f32 %v515_v41, %v2085_v60  ;;  %v971_v53 = vstv %s2155_s26  ;;  %v1125_v61 = vmul.f32 %v1124_v52, %v2085_v60  ;;  %s1643_s26 = sld [smem:[#allocation4 + $0x13]] }
  0x70   : > { %v2187_v46 = vadd.f32 %v633_v43, %v630_v38  ;;  %v819_v0 = vstv %s2180_s28  ;;  %v677_v11 = vstv %s2199_s8  ;;  %v1286_v15 = vstv %s1655_s15  ;;  %s1617_s28 = sld [smem:[#allocation4 + $0x18]]  ;;  %s1657_s8 = sld [smem:[#allocation4 + $0x14]] }
  0x71   : > { %383 = vrot.lane.b32.xlu1 %v381_v57, %s2742_s20  ;;  %507 = vrot.lane.b32.xlu0 %v505_v58, %s2746_s29  ;;  %v1133_v16 = vstv %s1642_s17  ;;  %v1287_v17 = vmul.f32 %v1286_v15, %v2085_v60  ;;  %v991_v24 = vstv %s1630_s22  ;;  %s1644_s15 = sld [smem:[#allocation4 + $0x44]]  ;;  %s1579_s17 = sld [smem:[#allocation4 + $0x23]] }
  0x72   : > { %v1134_v18 = vmul.f32 %v1133_v16, %v2071_v47  ;;  %v686_v26 = vstv %s1604_s24  ;;  %v992_v27 = vmul.f32 %v991_v24, %v2071_v47  ;;  %s1645_s22 = sld [smem:[#allocation4 + $0x1a]] }
  0x73   : > { %v687_v28 = vmul.f32 %v686_v26, %v2071_v47  ;;  %v1295_v29 = vstv %s1656_s25  ;;  %s1632_s24 = sld [smem:[#allocation4 + $0x4a]]  ;;  %s1619_s25 = sld [smem:[#allocation4 + $0x1f]] }
  0x74   : > { %v1296_v31 = vmul.f32 %v1295_v29, %v2071_v47 }
  0x75   : > { %487 = vrot.lane.b32.xlu1 %v485_v62, %s1876_s30  ;;  %308 = vrot.lane.b32.xlu0 %v306_v63, %s1876_s30  ;;  %v972_v62 = vmul.f32 %v971_v53, %v2071_v47  ;;  %v524_v63 = vstv %s2178_s27  ;;  %s1592_s27 = sld [smem:[#allocation4 + $0x4e]]  ;;  %v1144_v30 = vstv %s1643_s26  ;;  %s1658_s26 = sld [smem:[#allocation4 + $0x45]] }
  0x76   : > { %v1145_v33 = vmul.f32 %v1144_v30, %v2085_v60 }
  0x77   : > { %v1153_v45 = vstv %s1644_s15  ;;  %s1659_s15 = sld [smem:[#allocation4 + $0x1b]] }
  0x79   : > { %811 = vrot.lane.b32.xlu1 %v809_v3, %s1876_s30  ;;  %350 = vrot.lane.b32.xlu0 %v348_v4, %s2744_s7  ;;  %s2161_s7 = sld [smem:[#allocation4 + $0x5]]  ;;  %v1278_v3 = vstv %s1653_s21  ;;  %v1281_v4 = vstv %s1654_s3  ;;  %s2761_s21 = smov 64  }
  0x7a   : > { %v1279_v5 = vmul.f32 %v1278_v3, %v2085_v60  ;;  %v1282_v7 = vmul.f32 %v1281_v4, %v2071_v47  ;;  %s1631_s3 = sld [smem:[#allocation4 + $0x19]]  ;;  %v861_v3 = vstv %s1619_s25  ;;  %s1621_s25 = sld [smem:[#allocation4 + $0x26]] }
  0x7b   : > { %v544_v34 = vstv %s1592_s27  ;;  %s1879_s27 = smov 48   ;;  %v1315_v4 = vstv %s1658_s26  ;;  %s1660_s26 = sld [smem:[#allocation4 + $0x4c]] }
  0x7c   : > { %v2223_v12 = vadd.f32 %v1282_v7, %v1279_v5  ;;  %v862_v5 = vmul.f32 %v861_v3, %v2099_v6  ;;  %v1316_v7 = vmul.f32 %v1315_v4, %v2071_v47 }
  0x7d   : > { %329 = vrot.lane.b32.xlu1 %v327_v8, %s2746_s29  ;;  %373 = vrot.lane.b32.xlu0 %v371_v9, %s2742_s20  ;;  %s2139_s20 = sld [smem:[#allocation4 + $0x4]]  ;;  %v525_v8 = vmul.f32 %v524_v63, %v2071_v47  ;;  %v820_v9 = vmul.f32 %v819_v0, %v2085_v60  ;;  %v1326_v16 = vstv %s1659_s15 }
  0x7e   : > { %s1609_s15 = sld [smem:[#allocation4 + $0x2c]] }
  0x7f   : > { %v1116_v56 = vstv %s2161_s7  ;;  %s1616_s7 = sld [smem:[#allocation4 + $0x42]] }
  0x80   : > { %v1117_v58 = vmul.f32 %v1116_v56, %v2085_v60  ;;  %v1002_v39 = vstv %s1631_s3  ;;  %s1580_s3 = sld [smem:[#allocation4 + $0x54]] }
  0x81   : > { %498 = vrot.lane.b32.xlu1 %v496_v13, %s2746_s29  ;;  %478 = vrot.lane.b32.xlu0 %v476_v14, %s1876_s30  ;;  %s2163_s29 = sld [smem:[#allocation4 + $0x36]]  ;;  %v678_v14 = vmul.f32 %v677_v11, %v2085_v60  ;;  %v1003_v41 = vmul.f32 %v1002_v39, %v2099_v6 }
  0x83   : > { %v954_v44 = vstv %s2139_s20  ;;  %s2197_s20 = sld [smem:[#allocation4 + $0x12]] }
  0x84   : > { %v955_v48 = vmul.f32 %v954_v44, %v2085_v60  ;;  %v1306_v44 = vstv %s1657_s8  ;;  %s1607_s8 = sld [smem:[#allocation4 + $0x25]] }
  0x85   : > { %802 = vrot.lane.b32.xlu1 %v800_v21, %s1876_s30  ;;  %640 = vrot.lane.b32.xlu0 %v638_v22, %s1876_s30  ;;  %v828_v21 = vstv %s1616_s7  ;;  %s1593_s7 = sld [smem:[#allocation4 + $0x24]] }
  0x86   : > { %v2201_v55 = vadd.f32 %v958_v49, %v955_v48  ;;  %v829_v23 = vmul.f32 %v828_v21, %v2071_v47  ;;  %v1307_v48 = vmul.f32 %v1306_v44, %v2085_v60  ;;  %v1154_v49 = vmul.f32 %v1153_v45, %v2071_v47 }
  0x87   : > { %v1119_v57 = vstv %s2163_s29  ;;  %s1591_s29 = sld [smem:[#allocation4 + $0x1d]] }
  0x88   : > { %v1120_v59 = vmul.f32 %v1119_v57, %v2071_v47 }
  0x89   : > { %660 = vrot.lane.b32.xlu1 %v658_v36, %s2759_s4  ;;  %965 = vrot.lane.b32.xlu0 %v963_v37, %s1876_s30  ;;  %v982_v10 = vstv %s2197_s20  ;;  %s1605_s20 = sld [smem:[#allocation4 + $0x1e]]  ;;  %v841_v36 = vstv %s1617_s28  ;;  %v545_v37 = vmul.f32 %v544_v34, %v2079_v54  ;;  %s1594_s28 = sld [smem:[#allocation4 + $0x55]] }
  0x8a   : > { %v2213_v2 = vadd.f32 %v1120_v59, %v1117_v58  ;;  %v983_v13 = vmul.f32 %v982_v10, %v2085_v60  ;;  %v842_v38 = vmul.f32 %v841_v36, %v837_v35  ;;  %v881_v35 = vstv %s1621_s25  ;;  %s2341_s25 = sld [smem:[#allocation4 + $0x59]] }
  0x8b   : > { %v555_v58 = vstv %s1593_s7  ;;  %s1608_s7 = sld [smem:[#allocation4 + $0x56]]  ;;  %v1335_v36 = vstv %s1660_s26  ;;  %v882_v39 = vmul.f32 %v881_v35, %v2099_v6 }
  0x8c   : > { %v556_v59 = vmul.f32 %v555_v58, %v2099_v6  ;;  %s2343_s26 = sld [smem:[#allocation4 + $0x2e]] }
  0x8d   : > { %669 = vrot.lane.b32.xlu1 %v667_v50, %s2759_s4  ;;  %518 = vrot.lane.b32.xlu0 %v516_v51, %s2760_s14  ;;  %v535_v19 = vstv %s1591_s29  ;;  %s1618_s29 = sld [smem:[#allocation4 + $0x49]]  ;;  %v391_v50 = vstv %s1579_s17  ;;  %v838_v51 = vld [vmem:[#allocation3 + $0x1] sm:$0x3]  ;;  %s1646_s17 = sld [smem:[#allocation4 + $0x4b]] }
  0x8e   : > { %v536_v22 = vmul.f32 %v535_v19, %v2099_v6  ;;  %v392_v53 = vmul.f32 %v391_v50, %v2099_v6 }
  0x8f   : > { %v697_v40 = vstv %s1605_s20  ;;  %s1633_s20 = sld [smem:[#allocation4 + $0x20]] }
  0x90   : > { %v698_v43 = vmul.f32 %v697_v40, %v2099_v6  ;;  %v1336_v40 = vmul.f32 %v1335_v36, %v2079_v54 }
  0x91   : > { %1127 = vrot.lane.b32.xlu1 %v1125_v61, %s1876_s30  ;;  %974 = vrot.lane.b32.xlu0 %v972_v62, %s1876_s30  ;;  %v1164_v61 = vstv %s1645_s22  ;;  %v1011_v62 = vstv %s1632_s24  ;;  %s1647_s22 = sld [smem:[#allocation4 + $0x21]] }
  0x92   : > { %v1165_v63 = vmul.f32 %v1164_v61, %v2099_v6  ;;  %v1012_v0 = vmul.f32 %v1011_v62, %v2079_v54  ;;  %s1634_s24 = sld [smem:[#allocation4 + $0x51]]  ;;  %v726_v26 = vstv %s1608_s7  ;;  %s2313_s7 = sld [smem:[#allocation4 + $0x57]] }
  0x93   : > { %v850_v52 = vstv %s1618_s29  ;;  %s1581_s29 = sld [smem:[#allocation4 + $0x2a]] }
  0x94   : > { %v851_v56 = vmul.f32 %v850_v52, %v838_v51  ;;  %v737_v51 = vstv %s1609_s15  ;;  %s2385_s15 = sld [smem:[#allocation4 + $0x5f]] }
  0x95   : > { %527 = vrot.lane.b32.xlu1 %v525_v8, %s2760_s14  ;;  %822 = vrot.lane.b32.xlu0 %v820_v9, %s2759_s4  ;;  %v564_v8 = vstv %s1594_s28  ;;  %v401_v9 = vstv %s1580_s3  ;;  %s1880_s28 = smov 32   ;;  %s1596_s3 = sld [smem:[#allocation4 + $0x5c]] }
  0x96   : > { %v565_v10 = vmul.f32 %v564_v8, %v2079_v54  ;;  %v402_v11 = vmul.f32 %v401_v9, %v2079_v54 }
  0x97   : > { %v1184_v30 = vstv %s1647_s22  ;;  %s2330_s22 = sld [smem:[#allocation4 + $0x2d]] }
  0x99   : > { %985 = vrot.lane.b32.xlu1 %v983_v13, %s2759_s4  ;;  %680 = vrot.lane.b32.xlu0 %v678_v14, %s2760_s14  ;;  %v1022_v13 = vstv %s1633_s20  ;;  %v717_v14 = vstv %s1607_s8  ;;  %s1582_s20 = sld [smem:[#allocation4 + $0x5b]]  ;;  %s1635_s8 = sld [smem:[#allocation4 + $0x27]] }
  0x9a   : > { %v1023_v47 = vmul.f32 %v1022_v13, %v2099_v6  ;;  %v718_v15 = vmul.f32 %v717_v14, %v2099_v6  ;;  %v412_v21 = vstv %s1581_s29  ;;  %s1648_s29 = sld [smem:[#allocation4 + $0x52]] }
  0x9d   : > { %1289 = vrot.lane.b32.xlu1 %v1287_v17, %s1876_s30  ;;  %1136 = vrot.lane.b32.xlu0 %v1134_v18, %s1876_s30  ;;  %v1173_v17 = vstv %s1646_s17  ;;  %v1327_v18 = vmul.f32 %v1326_v16, %v2099_v6  ;;  %s2301_s17 = sld [smem:[#allocation4 + $0x22]] }
  0x9e   : > { %v1174_v19 = vmul.f32 %v1173_v17, %v2079_v54  ;;  %v901_v17 = vstv %s2330_s22  ;;  %s1886_s22 = smov 45  }
  0x9f   : > { %v1042_v50 = vstv %s1635_s8  ;;  %v902_v35 = vmul.f32 %v901_v17, %v2099_v6  ;;  %s2383_s8 = sld [smem:[#allocation4 + $0x2f]] }
  0xa1   : > { %538 = vrot.lane.b32.xlu1 %v536_v22, %s2761_s21  ;;  %831 = vrot.lane.b32.xlu0 %v829_v23, %s2759_s4  ;;  %v413_v23 = vmul.f32 %v412_v21, %v2099_v6 }
  0xa3   : > { %v1346_v58 = vstv %s2301_s17  ;;  %s2403_s17 = sld [smem:[#allocation4 + $0x60]] }
  0xa5   : > { %994 = vrot.lane.b32.xlu1 %v992_v27, %s2759_s4  ;;  %689 = vrot.lane.b32.xlu0 %v687_v28, %s2760_s14  ;;  %v727_v28 = vmul.f32 %v726_v26, %v2079_v54 }
  0xa9   : > { %1298 = vrot.lane.b32.xlu1 %v1296_v31, %s1876_s30  ;;  %1147 = vrot.lane.b32.xlu0 %v1145_v33, %s2759_s4  ;;  %s1606_s30 = sld [smem:[#allocation4 + $0x4f]]  ;;  %v1031_v31 = vstv %s1634_s24  ;;  %v1185_v33 = vmul.f32 %v1184_v30, %v2099_v6  ;;  %s2332_s24 = sld [smem:[#allocation4 + $0x53]] }
  0xaa   : > { %v1032_v34 = vmul.f32 %v1031_v31, %v2079_v54 }
  0xad   : > { %547 = vrot.lane.b32.xlu1 %v545_v37, %s2761_s21  ;;  %844 = vrot.lane.b32.xlu0 %v842_v38, %s2760_s14 }
  0xaf   : > { %v706_v57 = vstv %s1606_s30  ;;  %s1620_s30 = sld [smem:[#allocation4 + $0x50]]  ;;  %v1355_v21 = vstv %s2332_s24  ;;  %s1675_s24 = sshll.u32 %s1924_s13, 7 }
  0xb0   : > { %v707_v60 = vmul.f32 %v706_v57, %v2079_v54  ;;  %v738_v57 = vmul.f32 %v737_v51, %v2099_v6  ;;  %v1356_v36 = vmul.f32 %v1355_v21, %v2079_v54  ;;  %s1887_s13 = smov [#allocation9]  }
  0xb1   : > { %1005 = vrot.lane.b32.xlu1 %v1003_v41, %s2760_s14  ;;  %700 = vrot.lane.b32.xlu0 %v698_v43, %s2761_s21  ;;  %v584_v41 = vstv %s1596_s3  ;;  %v422_v43 = vstv %s1582_s20  ;;  %s2347_s3 = sld [smem:[#allocation4 + $0x5e]]  ;;  %s2364_s20 = sld [smem:[#allocation4 + $0x29]] }
  0xb5   : > { %1309 = vrot.lane.b32.xlu1 %v1307_v48, %s2759_s4  ;;  %1156 = vrot.lane.b32.xlu0 %v1154_v49, %s2759_s4  ;;  %v870_v22 = vstv %s1620_s30  ;;  %v585_v48 = vmul.f32 %v584_v41, %v2079_v54  ;;  %v423_v49 = vmul.f32 %v422_v43, %v2079_v54  ;;  %s2311_s30 = sld [smem:[#allocation4 + $0x5d]] }
  0xb6   : > { %v871_v24 = vmul.f32 %v870_v22, %v2079_v54 }
  0xb7   : > { %v910_v41 = vstv %s2347_s3 }
  0xb9   : > { %394 = vrot.lane.b32.xlu1 %v392_v53, %s1879_s27  ;;  %853 = vrot.lane.b32.xlu0 %v851_v56, %s2760_s14  ;;  %v1043_v56 = vmul.f32 %v1042_v50, %v2099_v6 }
  0xbb   : > { %v746_v4 = vstv %s2311_s30  ;;  %s2423_s30 = sld [smem:[#allocation4 + $0x61]] }
  0xbd   : > { %709 = vrot.lane.b32.xlu1 %v707_v60, %s2761_s21  ;;  %558 = vrot.lane.b32.xlu0 %v556_v59, %s1879_s27  ;;  %v1193_v60 = vstv %s1648_s29  ;;  %s2405_s29 = sld [smem:[#allocation4 + $0x5a]] }
  0xc1   : > { %1167 = vrot.lane.b32.xlu1 %v1165_v63, %s2760_s14  ;;  %1014 = vrot.lane.b32.xlu0 %v1012_v0, %s2760_s14  ;;  %v1347_v63 = vmul.f32 %v1346_v58, %v2099_v6  ;;  %v1194_v0 = vmul.f32 %v1193_v60, %v2079_v54 }
  0xc5   : > { %864 = vrot.lane.b32.xlu1 %v862_v5, %s2761_s21  ;;  %1318 = vrot.lane.b32.xlu0 %v1316_v7, %s2759_s4  ;;  %s1595_s4 = sld [smem:[#allocation4 + $0x2b]]  ;;  %v890_v5 = vstv %s2313_s7  ;;  %s1882_s7 = smov 50  }
  0xc6   : > { %v891_v13 = vmul.f32 %v890_v5, %v2079_v54 }
  0xc9   : > { %567 = vrot.lane.b32.xlu1 %v565_v10, %s1879_s27  ;;  %404 = vrot.lane.b32.xlu0 %v402_v11, %s1879_s27  ;;  %v747_v11 = vmul.f32 %v746_v4, %v2079_v54 }
  0xcb   : > { %v575_v27 = vstv %s1595_s4  ;;  %s2326_s4 = sld [smem:[#allocation4 + $0x58]] }
  0xcc   : > { %v576_v29 = vmul.f32 %v575_v27, %v2099_v6 }
  0xcd   : > { %1025 = vrot.lane.b32.xlu1 %v1023_v47, %s2761_s21  ;;  %720 = vrot.lane.b32.xlu0 %v718_v15, %s1879_s27 }
  0xd1   : > { %1329 = vrot.lane.b32.xlu1 %v1327_v18, %s2760_s14  ;;  %1176 = vrot.lane.b32.xlu0 %v1174_v19, %s2760_s14  ;;  %v1051_v47 = vstv %s2326_s4  ;;  %s1884_s4 = smov 47  }
  0xd5   : > { %415 = vrot.lane.b32.xlu1 %v413_v23, %s1880_s28  ;;  %873 = vrot.lane.b32.xlu0 %v871_v24, %s2761_s21  ;;  %v1052_v24 = vmul.f32 %v1051_v47, %v2079_v54 }
  0xd9   : > { %729 = vrot.lane.b32.xlu1 %v727_v28, %s1879_s27  ;;  %578 = vrot.lane.b32.xlu0 %v576_v29, %s1880_s28  ;;  %v1213_v28 = vstv %s2341_s25  ;;  %v1062_v29 = vstv %s2343_s26  ;;  %s2762_s25 = sshll.u32 %s2052_s19, 3 }
  0xda   : > { %v1063_v50 = vmul.f32 %v1062_v29, %v2099_v6  ;;  %s171_s26 = scalar_lea.vmem [#allocation9], %s2762_s25 }
  0xdb   : > { %v2295_v37 = vpop.permute.xlu1 %339  ;;  %v319_v38 = vpop.permute.xlu0 %318  ;;  %s1477_s3 = sshll.u32 %s171_s26, 4  ;;  %s2693_s3 = int_to_ptr.vmem [resolvable:$true] %s1477_s3 }
  0xdc   : > { %v320_v9 = vrot.slane %v319_v38, 1  ;;  %v341_v18 = vrot.slane %v2295_v37, 1 }
  0xdd   : > { %1187 = vrot.lane.b32.xlu1 %v1185_v33, %s2761_s21  ;;  %1034 = vrot.lane.b32.xlu0 %v1032_v34, %s2761_s21 }
  0xdf   : > { %v2303_v44 = vpop.permute.xlu1 %360  ;;  %v2305_v45 = vpop.permute.xlu0 %649 }
  0xe0   : > { %v362_v30 = vrot.slane %v2303_v44, 1  ;;  %v651_v43 = vrot.slane %v2305_v45, 1 }
  0xe1   : > { %884 = vrot.lane.b32.xlu1 %v882_v39, %s1879_s27  ;;  %1338 = vrot.lane.b32.xlu0 %v1336_v40, %s2760_s14  ;;  %s2324_s14 = sld [smem:[#allocation4 + $0x28]] }
  0xe2   : > { %v363_v58 = vsel %vm353_vm5, %v2303_v44, %v362_v30 }
  0xe3   : > { %v2315_v52 = vpop.permute.xlu1 %383  ;;  %v2317_v53 = vpop.permute.xlu0 %507 }
  0xe5   : > { %587 = vrot.lane.b32.xlu1 %v585_v48, %s1880_s28  ;;  %425 = vrot.lane.b32.xlu0 %v423_v49, %s1880_s28  ;;  %v1214_v49 = vmul.f32 %v1213_v28, %v2079_v54  ;;  %v1071_v28 = vstv %s2385_s15  ;;  %s2691_s15 = scalar_lea.hbm %s2737_s2, %s1675_s24 }
  0xe7   : > { %v2328_v59 = vpop.permute.xlu1 %487  ;;  %v309_v61 = vpop.permute.xlu0 %308  ;;  %v1204_v14 = vstv %s2324_s14  ;;  %s1883_s14 = smov 49  }
  0xe8   : > { %v310_v62 = vrot.slane %v309_v61, 1  ;;  %v1205_v23 = vmul.f32 %v1204_v14, %v2099_v6  ;;  %v489_v39 = vrot.slane %v2328_v59, 1 }
  0xe9   : > { %1045 = vrot.lane.b32.xlu1 %v1043_v56, %s1879_s27  ;;  %740 = vrot.lane.b32.xlu0 %v738_v57, %s1880_s28 }
  0xea   : > { %v312_v3 = vsel %vm311_vm3, %v309_v61, %v310_v62 }
  0xeb   : > { %v2345_v7 = vpop.permute.xlu1 %811  ;;  %v351_v8 = vpop.permute.xlu0 %350  ;;  %v314_v10 = vadd.f32 %v312_v3, %v2143_v20  ;;  %v321_v20 = vsel %vm311_vm3, %v319_v38, %v320_v9  ;;  %v342_v38 = vsel %vm332_vm4, %v2295_v37, %v341_v18  ;;  %v490_v3 = vsel %vm311_vm3, %v2328_v59, %v489_v39 }
  0xec   : > { %v352_v26 = vrot.slane %v351_v8, 1  ;;  %v813_v4 = vrot.slane %v2345_v7, 1  ;;  %v652_v9 = vsel %vm311_vm3, %v2305_v45, %v651_v43  ;;  %v1072_v39 = vmul.f32 %v1071_v28, %v2079_v54 }
  0xed   : > { %1349 = vrot.lane.b32.xlu1 %v1347_v63, %s2761_s21  ;;  %1196 = vrot.lane.b32.xlu0 %v1194_v0, %s2761_s21  ;;  %v323_v22 = vadd.f32 %v321_v20, %v314_v10  ;;  %v911_v0 = vmul.f32 %v910_v41, %v2079_v54  ;;  %v509_v20 = vrot.slane %v2317_v53, 1  ;;  %v1233_v41 = vstv %s2403_s17  ;;  %s1463_s17 = scalar_lea.sflag [#allocation6], %s2052_s19 }
  0xee   : > { %v354_v51 = vsel %vm353_vm5, %v351_v8, %v352_v26  ;;  %v1375_v43 = vstv %s2405_s29  ;;  %s1803_s29 = sshll.u32 %s1887_s13, 4  ;;  %s1804_s29 = int_to_ptr.vmem [resolvable:$false] %s1803_s29 }
  0xef   : > { %v330_v15 = vpop.permute.xlu1 %329  ;;  %v374_v16 = vpop.permute.xlu0 %373  ;;  %p1806_p1 = scmp.lt.s32.totalorder %s2693_s3, %s1804_s29 }
  0xf0   : > { %v331_v19 = vrot.slane %v330_v15, 1  ;;  %v375_v56 = vrot.slane %v374_v16, 7 }
  0xf1   : > { %749 = vrot.lane.b32.xlu1 %v747_v11, %s1880_s28  ;;  %893 = vrot.lane.b32.xlu0 %v891_v13, %s1879_s27 }
  0xf2   : > { %v333_v27 = vsel %vm332_vm4, %v330_v15, %v331_v19  ;;  %v377_v44 = vsel %vm376_vm6, %v375_v56, %v374_v16  ;;  %v814_v19 = vsel %vm311_vm3, %v2345_v7, %v813_v4 }
  0xf3   : > { %v335_v31 = vadd.f32 %v333_v27, %v323_v22  ;;  %v499_v33 = vpop.permute.xlu1 %498  ;;  %v479_v34 = vpop.permute.xlu0 %478  ;;  %v1224_v27 = vstv %s2383_s8 }
  0xf4   : > { %v480_v40 = vrot.slane %v479_v34, 1  ;;  %v500_v57 = vrot.slane %v499_v33, 1 }
  0xf5   : > { %v344_v48 = vadd.f32 %v342_v38, %v335_v31  ;;  %1207 = vrot.lane.b32.xlu1 %v1205_v23, %s1879_s27  ;;  %1054 = vrot.lane.b32.xlu0 %v1052_v24, %s1879_s27  ;;  %v1225_v38 = vmul.f32 %v1224_v27, %v2099_v6 }
  0xf6   : > { %v481_v37 = vsel %vm311_vm3, %v479_v34, %v480_v40  ;;  %v501_v13 = vsel %vm332_vm4, %v499_v33, %v500_v57  ;;  %v510_v33 = vsel %vm332_vm4, %v2317_v53, %v509_v20  ;;  %v1234_v57 = vmul.f32 %v1233_v41, %v2079_v54 }
  0xf7   : > { %v356_v60 = vadd.f32 %v354_v51, %v344_v48  ;;  %v483_v61 = vadd.f32 %v481_v37, %v2165_v32  ;;  %v803_v62 = vpop.permute.xlu1 %802  ;;  %v641_v63 = vpop.permute.xlu0 %640  ;;  %v1366_v32 = vstv %s2364_s20  ;;  %v1376_v37 = vmul.f32 %v1375_v43, %v2079_v54 }
  0xf8   : > { %v804_v5 = vrot.slane %v803_v62, 1  ;;  %v642_v8 = vrot.slane %v641_v63, 1 }
  0xf9   : > { %v365_v10 = vadd.f32 %v363_v58, %v356_v60  ;;  %v492_v11 = vadd.f32 %v490_v3, %v483_v61  ;;  %904 = vrot.lane.b32.xlu1 %v902_v35, %s1880_s28  ;;  %1358 = vrot.lane.b32.xlu0 %v1356_v36, %s2761_s21  ;;  %s2421_s21 = sld [smem:[#allocation4 + $0x30]] }
  0xfa   : > { %v805_v59 = vsel %vm311_vm3, %v803_v62, %v804_v5  ;;  %v643_v14 = vsel %vm311_vm3, %v641_v63, %v642_v8  ;;  %v1395_v62 = vstv %s2423_s30 }
  0xfb   : > { %v2407_v45 = vadd.f32 %v377_v44, %v365_v10  ;;  %v807_v47 = vadd.f32 %v805_v59, %v2182_v42  ;;  %v645_v15 = vadd.f32 %v643_v14, %v2187_v46  ;;  %v661_v17 = vpop.permute.xlu1 %660  ;;  %v966_v16 = vpop.permute.xlu0 %965  ;;  %v503_v18 = vadd.f32 %v501_v13, %v492_v11 }
  0xfc   : > { %v662_v21 = vrot.slane %v661_v17, 1  ;;  %v967_v22 = vrot.slane %v966_v16, 1  ;;  %v1367_v42 = vmul.f32 %v1366_v32, %v2099_v6  ;;  %v1396_v10 = vmul.f32 %v1395_v62, %v2079_v54 }
  0xfd   : > { %v654_v23 = vadd.f32 %v652_v9, %v645_v15  ;;  %1216 = vrot.lane.b32.xlu1 %v1214_v49, %s1879_s27  ;;  %1065 = vrot.lane.b32.xlu0 %v1063_v50, %s1880_s28  ;;  %v816_v24 = vadd.f32 %v814_v19, %v807_v47  ;;  %v512_v36 = vadd.f32 %v510_v33, %v503_v18 }
  0xfe   : > { %v663_v46 = vsel %vm332_vm4, %v661_v17, %v662_v21  ;;  %v968_v26 = vsel %vm311_vm3, %v966_v16, %v967_v22 }
  0xff   : > { %v665_v7 = vadd.f32 %v663_v46, %v654_v23  ;;  %v970_v29 = vadd.f32 %v968_v26, %v2201_v55  ;;  %v670_v30 = vpop.permute.xlu1 %669  ;;  %v519_v31 = vpop.permute.xlu0 %518  ;;  %v1386_v61 = vstv %s2421_s21  ;;  %s1805_s21 = scalar_lea.vmem %s1804_s29, 256 }
 0x100   : > { %v671_v34 = vrot.slane %v670_v30, 1  ;;  %v520_v35 = vrot.slane %v519_v31, 1  ;;  %v1387_v9 = vmul.f32 %v1386_v61, %v2099_v6 }
 0x101   : > { %913 = vrot.lane.b32.xlu1 %v911_v0, %s1880_s28  ;;  %1369 = vrot.lane.b32.xlu0 %v1367_v42, %s1879_s27 }
 0x102   : > { %v672_v40 = vsel %vm332_vm4, %v670_v30, %v671_v34  ;;  %v521_v55 = vsel %vm353_vm5, %v519_v31, %v520_v35 }
 0x103   : > { %v674_v53 = vadd.f32 %v672_v40, %v665_v7  ;;  %v523_v48 = vadd.f32 %v521_v55, %v512_v36  ;;  %v1128_v49 = vpop.permute.xlu1 %1127  ;;  %v975_v50 = vpop.permute.xlu0 %974 }
 0x104   : > { %v1129_v51 = vrot.slane %v1128_v49, 1  ;;  %v976_v56 = vrot.slane %v975_v50, 1 }
 0x105   : > { %1227 = vrot.lane.b32.xlu1 %v1225_v38, %s1880_s28  ;;  %1074 = vrot.lane.b32.xlu0 %v1072_v39, %s1880_s28 }
 0x106   : > { %v1130_v58 = vsel %vm311_vm3, %v1128_v49, %v1129_v51  ;;  %v977_v60 = vsel %vm311_vm3, %v975_v50, %v976_v56 }
 0x107   : > { %v1132_v63 = vadd.f32 %v1130_v58, %v2213_v2  ;;  %v979_v0 = vadd.f32 %v977_v60, %v970_v29  ;;  %v528_v3 = vpop.permute.xlu1 %527  ;;  %v823_v4 = vpop.permute.xlu0 %822 }
 0x108   : > { %v529_v5 = vrot.slane %v528_v3, 1  ;;  %v824_v8 = vrot.slane %v823_v4, 1 }
 0x109   : > { %1236 = vrot.lane.b32.xlu1 %v1234_v57, %s1880_s28  ;;  %1378 = vrot.lane.b32.xlu0 %v1376_v37, %s1879_s27 }
 0x10a   : > { %v530_v11 = vsel %vm353_vm5, %v528_v3, %v529_v5  ;;  %v825_v32 = vsel %vm332_vm4, %v823_v4, %v824_v8 }
 0x10b   : > { %v532_v44 = vadd.f32 %v530_v11, %v523_v48  ;;  %v827_v13 = vadd.f32 %v825_v32, %v816_v24  ;;  %v986_v2 = vpop.permute.xlu1 %985  ;;  %v681_v59 = vpop.permute.xlu0 %680 }
 0x10c   : > { %v987_v14 = vrot.slane %v986_v2, 1  ;;  %v682_v47 = vrot.slane %v681_v59, 1 }
 0x10d   : > { %1389 = vrot.lane.b32.xlu0 %v1387_v9, %s1880_s28  ;;  %1398 = vrot.lane.b32.xlu1 %v1396_v10, %s1880_s28  ;;  %s1881_s28 = smov 51  }
 0x10e   : > { %v988_v15 = vsel %vm332_vm4, %v986_v2, %v987_v14  ;;  %v683_v6 = vsel %vm353_vm5, %v681_v59, %v682_v47 }
 0x10f   : > { %v990_v17 = vadd.f32 %v988_v15, %v979_v0  ;;  %v685_v54 = vadd.f32 %v683_v6, %v674_v53  ;;  %v1290_v16 = vpop.permute.xlu1 %1289  ;;  %v1137_v18 = vpop.permute.xlu0 %1136 }
 0x110   : > { %v1291_v20 = vrot.slane %v1290_v16, 1  ;;  %v1138_v19 = vrot.slane %v1137_v18, 1 }
 0x112   : > { %v1292_v21 = vsel %vm311_vm3, %v1290_v16, %v1291_v20  ;;  %v1139_v22 = vsel %vm311_vm3, %v1137_v18, %v1138_v19 }
 0x113   : > { %v1294_v23 = vadd.f32 %v1292_v21, %v2223_v12  ;;  %v1141_v42 = vadd.f32 %v1139_v22, %v1132_v63  ;;  %v539_v24 = vpop.permute.xlu1 %538  ;;  %v832_v46 = vpop.permute.xlu0 %831 }
 0x114   : > { %v540_v26 = vrot.slane %v539_v24, 7  ;;  %v833_v27 = vrot.slane %v832_v46, 1 }
 0x116   : > { %v541_v28 = vsel %vm376_vm6, %v540_v26, %v539_v24  ;;  %v834_v7 = vsel %vm332_vm4, %v832_v46, %v833_v27  ;;  %v385_v27 = vrot.slane %v2315_v52, 7 }
 0x117   : > { %v2460_v29 = vadd.f32 %v541_v28, %v532_v44  ;;  %v836_v30 = vadd.f32 %v834_v7, %v827_v13  ;;  %v995_v31 = vpop.permute.xlu1 %994  ;;  %v690_v33 = vpop.permute.xlu0 %689 }
 0x118   : > { %v996_v34 = vrot.slane %v995_v31, 1  ;;  %v691_v35 = vrot.slane %v690_v33, 1 }
 0x11a   : > { %v997_v36 = vsel %vm332_vm4, %v995_v31, %v996_v34  ;;  %v692_v12 = vsel %vm353_vm5, %v690_v33, %v691_v35  ;;  %v386_v35 = vsel %vm376_vm6, %v385_v27, %v2315_v52  ;;  %v2541_v27 = vsub.s32 2, %v2067_v25 }
 0x11b   : > { %v999_v38 = vadd.f32 %v997_v36, %v990_v17  ;;  %v2464_v39 = vadd.f32 %v692_v12, %v685_v54  ;;  %v1299_v40 = vpop.permute.xlu1 %1298  ;;  %v1148_v55 = vpop.permute.xlu0 %1147 }
 0x11c   : > { %v1300_v41 = vrot.slane %v1299_v40, 1  ;;  %v1149_v43 = vrot.slane %v1148_v55, 1 }
 0x11e   : > { %v1301_v53 = vsel %vm311_vm3, %v1299_v40, %v1300_v41  ;;  %v1150_v48 = vsel %vm332_vm4, %v1148_v55, %v1149_v43  ;;  %v388_v55 = vadd.f32 %v386_v35, %v2407_v45 }
 0x11f   : > { %v1303_v49 = vadd.f32 %v1301_v53, %v1294_v23  ;;  %v1152_v50 = vadd.f32 %v1150_v48, %v1141_v42  ;;  %v548_v51 = vpop.permute.xlu1 %547  ;;  %v845_v56 = vpop.permute.xlu0 %844 }
 0x120   : > { %v846_v57 = vrot.slane %v845_v56, 7  ;;  %v549_v28 = vrot.slane %v548_v51, 7 }
 0x122   : > { %v847_v37 = vsel %vm353_vm5, %v846_v57, %v845_v56  ;;  %v550_v36 = vsel %vm376_vm6, %v549_v28, %v548_v51 }
 0x123   : > { %v2469_v58 = vadd.f32 %v847_v37, %v836_v30  ;;  %v1006_v60 = vpop.permute.xlu1 %1005  ;;  %v2471_v61 = vpop.permute.xlu0 %700  ;;  %v552_v52 = vadd.f32 %v550_v36, %v2460_v29  ;;  %v2526_v29 = vsub.s32 1, %v2067_v25 }
 0x124   : > { %v1007_v62 = vrot.slane %v1006_v60, 7  ;;  %v702_v51 = vrot.slane %v2471_v61, 7 }
 0x126   : > { %v1008_v63 = vsel %vm353_vm5, %v1007_v62, %v1006_v60 }
 0x127   : > { %v2474_v0 = vadd.f32 %v1008_v63, %v999_v38  ;;  %v1310_v3 = vpop.permute.xlu1 %1309  ;;  %v1157_v4 = vpop.permute.xlu0 %1156 }
 0x128   : > { %v1311_v5 = vrot.slane %v1310_v3, 1  ;;  %v1158_v8 = vrot.slane %v1157_v4, 1 }
 0x12a   : > { %v1312_v9 = vsel %vm332_vm4, %v1310_v3, %v1311_v5  ;;  %v1159_v10 = vsel %vm332_vm4, %v1157_v4, %v1158_v8 }
 0x12b   : > { %v2478_v11 = vadd.f32 %v1312_v9, %v1303_v49  ;;  %v1161_v32 = vadd.f32 %v1159_v10, %v1152_v50  ;;  %v395_v44 = vpop.permute.xlu1 %394  ;;  %v2480_v13 = vpop.permute.xlu0 %853  ;;  %v2529_v10 = vsub.s32 0, %v2067_v25 }
 0x12c   : > { %v396_v7 = vrot.slane %v395_v44, 7 }
 0x12e   : > { %v398_v12 = vsel %vm397_vm7, %v396_v7, %v395_v44 }
 0x12f   : > { %v2482_v2 = vpop.permute.xlu1 %709  ;;  %v559_v59 = vpop.permute.xlu0 %558  ;;  %v400_v50 = vadd.f32 %v398_v12, %v388_v55 }
 0x130   : > { %v560_v33 = vrot.slane %v559_v59, 7  ;;  %v711_v63 = vrot.slane %v2482_v2, 7 }
 0x132   : > { %v561_v53 = vsel %vm397_vm7, %v560_v33, %v559_v59 }
 0x133   : > { %v1168_v14 = vpop.permute.xlu1 %1167  ;;  %v2484_v47 = vpop.permute.xlu0 %1014  ;;  %v563_v45 = vadd.f32 %v561_v53, %v552_v52 }
 0x134   : > { %v1169_v15 = vrot.slane %v1168_v14, 7 }
 0x136   : > { %v1170_v6 = vsel %vm353_vm5, %v1169_v15, %v1168_v14 }
 0x137   : > { %v2487_v17 = vadd.f32 %v1170_v6, %v1161_v32  ;;  %v2489_v54 = vpop.permute.xlu1 %864  ;;  %v2491_v16 = vpop.permute.xlu0 %1318  ;;  %v703_v32 = vsel %vm376_vm6, %v702_v51, %v2471_v61 }
 0x138   : > { %v705_v61 = vadd.f32 %v703_v32, %v2464_v39 }
 0x13b   : > { %v568_v18 = vpop.permute.xlu1 %567  ;;  %v405_v20 = vpop.permute.xlu0 %404 }
 0x13c   : > { %v406_v34 = vrot.slane %v405_v20, 7  ;;  %v569_v38 = vrot.slane %v568_v18, 7 }
 0x13e   : > { %v407_v48 = vsel %vm397_vm7, %v406_v34, %v405_v20  ;;  %v570_v56 = vsel %vm397_vm7, %v569_v38, %v568_v18 }
 0x13f   : > { %v2493_v19 = vpop.permute.xlu1 %1025  ;;  %v721_v21 = vpop.permute.xlu0 %720  ;;  %v409_v37 = vadd.f32 %v407_v48, %v400_v50  ;;  %v572_v8 = vadd.f32 %v570_v56, %v563_v45  ;;  %v866_v56 = vrot.slane %v2489_v54, 7  ;;  %v1016_v45 = vrot.slane %v2484_v47, 7 }
 0x140   : > { %v722_v44 = vrot.slane %v721_v21, 7 }
 0x142   : > { %v723_v34 = vsel %vm397_vm7, %v722_v44, %v721_v21  ;;  %v867_v44 = vsel %vm376_vm6, %v866_v56, %v2489_v54 }
 0x143   : > { %v2495_v22 = vpop.permute.xlu1 %1329  ;;  %v2497_v23 = vpop.permute.xlu0 %1176 }
 0x147   : > { %v416_v42 = vpop.permute.xlu1 %415  ;;  %v2499_v24 = vpop.permute.xlu0 %873 }
 0x148   : > { %v417_v40 = vrot.slane %v416_v42, 7 }
 0x14a   : > { %v419_v57 = vsel %vm418_vm8, %v417_v40, %v416_v42  ;;  %v712_v42 = vsel %vm376_vm6, %v711_v63, %v2482_v2 }
 0x14b   : > { %v2501_v46 = vpop.permute.xlu1 %729  ;;  %v579_v26 = vpop.permute.xlu0 %578  ;;  %v421_v9 = vadd.f32 %v419_v57, %v409_v37  ;;  %v714_v36 = vadd.f32 %v712_v42, %v705_v61 }
 0x14c   : > { %v580_v49 = vrot.slane %v579_v26, 7 }
 0x14d   : > { %v725_v39 = vadd.f32 %v723_v34, %v714_v36 }
 0x14e   : > { %v581_v3 = vsel %vm418_vm8, %v580_v49, %v579_v26  ;;  %v731_v26 = vrot.slane %v2501_v46, 7  ;;  %v855_v49 = vrot.slane %v2480_v13, 7 }
 0x14f   : > { %v2504_v30 = vpop.permute.xlu1 %1187  ;;  %v2506_v31 = vpop.permute.xlu0 %1034  ;;  %v583_v15 = vadd.f32 %v581_v3, %v572_v8  ;;  %v1320_v3 = vrot.slane %v2491_v16, 1  ;;  %v1331_v8 = vrot.slane %v2495_v22, 7 }
 0x150   : > { %v732_v25 = vsel %vm397_vm7, %v731_v26, %v2501_v46  ;;  %v856_v63 = vsel %vm353_vm5, %v855_v49, %v2480_v13  ;;  %v1017_v13 = vsel %vm353_vm5, %v1016_v45, %v2484_v47  ;;  %v1036_v26 = vrot.slane %v2506_v31, 7 }
 0x151   : > { %v734_v21 = vadd.f32 %v732_v25, %v725_v39  ;;  %v1321_v42 = vsel %vm332_vm4, %v2491_v16, %v1320_v3 }
 0x152   : > { %v1323_v36 = vadd.f32 %v1321_v42, %v2478_v11 }
 0x153   : > { %v2513_v41 = vpop.permute.xlu1 %884  ;;  %v2515_v43 = vpop.permute.xlu0 %1338 }
 0x157   : > { %v588_v60 = vpop.permute.xlu1 %587  ;;  %v426_v62 = vpop.permute.xlu0 %425 }
 0x158   : > { %v589_v4 = vrot.slane %v588_v60, 7  ;;  %v427_v5 = vrot.slane %v426_v62, 7 }
 0x15a   : > { %v590_v59 = vsel %vm418_vm8, %v589_v4, %v588_v60  ;;  %v428_v14 = vsel %vm418_vm8, %v427_v5, %v426_v62  ;;  %v875_v4 = vrot.slane %v2499_v24, 7  ;;  %v1027_v5 = vrot.slane %v2493_v19, 7 }
 0x15b   : > { %v430_v6 = vadd.f32 %v428_v14, %v421_v9  ;;  %v2535_v18 = vpop.permute.xlu1 %1045  ;;  %v741_v20 = vpop.permute.xlu0 %740  ;;  %v592_v28 = vadd.f32 %v590_v59, %v583_v15  ;;  %v886_v59 = vrot.slane %v2513_v41, 7  ;;  %v858_v14 = vadd.f32 %v856_v63, %v2469_v58 }
 0x15c   : > { %v742_v35 = vrot.slane %v741_v20, 7  ;;  %v1178_v15 = vrot.slane %v2497_v23, 7  ;;  %v876_v54 = vsel %vm376_vm6, %v875_v4, %v2499_v24  ;;  %v1028_v47 = vsel %vm376_vm6, %v1027_v5, %v2493_v19 }
 0x15d   : > { %v439_v7 = vrot.slane %v430_v6, %v2526_v29  ;;  %v435_v33 = vrot.slane %v430_v6, %v2529_v10  ;;  %v597_v2 = vrot.slane %v592_v28, %v2529_v10  ;;  %v443_v40 = vrot.slane %v430_v6, %v2541_v27 }
 0x15e   : > { %v743_v55 = vsel %vm418_vm8, %v742_v35, %v741_v20  ;;  %v605_v51 = vrot.slane %v592_v28, %v2541_v27  ;;  %v601_v46 = vrot.slane %v592_v28, %v2526_v29  ;;  %v869_v61 = vadd.f32 %v867_v44, %v858_v14 }
 0x15f   : > { %v2547_v12 = vpop.permute.xlu1 %1349  ;;  %v2549_v38 = vpop.permute.xlu0 %1196  ;;  %446 = vrot.lane.b32.xlu1 %v439_v7, %s1881_s28  ;;  %444 = vrot.lane.b32.xlu0 %v435_v33, %s1881_s28  ;;  %v745_v50 = vadd.f32 %v743_v55, %v734_v21  ;;  %v1332_v28 = vsel %vm353_vm5, %v1331_v8, %v2495_v22  ;;  %v1189_v33 = vrot.slane %v2504_v30, 7  ;;  %v887_v16 = vsel %vm397_vm7, %v886_v59, %v2513_v41 }
 0x160   : > { %v1047_v34 = vrot.slane %v2535_v18, 7  ;;  %v1019_v35 = vadd.f32 %v1017_v13, %v2474_v0  ;;  %v1179_v19 = vsel %vm353_vm5, %v1178_v15, %v2497_v23  ;;  %v878_v25 = vadd.f32 %v876_v54, %v869_v61 }
 0x161   : > { %v1198_v11 = vrot.slane %v2549_v38, 7  ;;  %v1190_v23 = vsel %vm376_vm6, %v1189_v33, %v2504_v30 }
 0x162   : > { %v1030_v21 = vadd.f32 %v1028_v47, %v1019_v35  ;;  %v889_v0 = vadd.f32 %v887_v16, %v878_v25  ;;  %v1048_v49 = vsel %vm397_vm7, %v1047_v34, %v2535_v18 }
 0x163   : > { %v750_v53 = vpop.permute.xlu1 %749  ;;  %v894_v48 = vpop.permute.xlu0 %893  ;;  %606 = vrot.lane.b32.xlu1 %v597_v2, %s1882_s7  ;;  %448 = vrot.lane.b32.xlu0 %v443_v40, %s1881_s28  ;;  %v1037_v2 = vsel %vm376_vm6, %v1036_v26, %v2506_v31  ;;  %v1340_v40 = vrot.slane %v2515_v43, 7  ;;  %v1181_v31 = vadd.f32 %v1179_v19, %v2487_v17  ;;  %v1199_v4 = vsel %vm376_vm6, %v1198_v11, %v2549_v38 }
 0x164   : > { %v751_v52 = vrot.slane %v750_v53, 7  ;;  %v895_v58 = vrot.slane %v894_v48, 7 }
 0x165   : > { %v1341_v45 = vsel %vm353_vm5, %v1340_v40, %v2515_v43  ;;  %v1192_v18 = vadd.f32 %v1190_v23, %v1181_v31  ;;  %vm1261_vm5 = vcmask 375808  }
 0x166   : > { %v752_v57 = vsel %vm418_vm8, %v751_v52, %v750_v53  ;;  %v896_v41 = vsel %vm397_vm7, %v895_v58, %v894_v48  ;;  %v1334_v53 = vadd.f32 %v1332_v28, %v1323_v36  ;;  %v1351_v48 = vrot.slane %v2547_v12, 7 }
 0x167   : > { %v754_v37 = vadd.f32 %v752_v57, %v745_v50  ;;  %v2562_v60 = vpop.permute.xlu1 %1207  ;;  %v1055_v62 = vpop.permute.xlu0 %1054  ;;  %610 = vrot.lane.b32.xlu1 %v605_v51, %s1882_s7  ;;  %608 = vrot.lane.b32.xlu0 %v601_v46, %s1882_s7  ;;  %v1039_v51 = vadd.f32 %v1037_v2, %v1030_v21  ;;  %v898_v46 = vadd.f32 %v896_v41, %v889_v0 }
 0x168   : > { %v1056_v55 = vrot.slane %v1055_v62, 7  ;;  %v1343_v44 = vadd.f32 %v1341_v45, %v1334_v53  ;;  %v1352_v43 = vsel %vm376_vm6, %v1351_v48, %v2547_v12  ;;  %v1201_v54 = vadd.f32 %v1199_v4, %v1192_v18 }
 0x169   : > { %v763_v9 = vrot.slane %v754_v37, %v2526_v29  ;;  %v759_v32 = vrot.slane %v754_v37, %v2529_v10  ;;  %v767_v7 = vrot.slane %v754_v37, %v2541_v27  ;;  %v1209_v37 = vrot.slane %v2562_v60, 7 }
 0x16a   : > { %v1057_v30 = vsel %vm397_vm7, %v1056_v55, %v1055_v62  ;;  %v1050_v3 = vadd.f32 %v1048_v49, %v1039_v51 }
 0x16b   : > { %v905_v6 = vpop.permute.xlu1 %904  ;;  %v2579_v20 = vpop.permute.xlu0 %1358  ;;  %770 = vrot.lane.b32.xlu1 %v763_v9, %s1883_s14  ;;  %768 = vrot.lane.b32.xlu0 %v759_v32, %s1883_s14  ;;  %v1210_v15 = vsel %vm397_vm7, %v1209_v37, %v2562_v60 }
 0x16c   : > { %v906_v24 = vrot.slane %v905_v6, 7  ;;  %v1360_v5 = vrot.slane %v2579_v20, 7  ;;  %v1059_v59 = vadd.f32 %v1057_v30, %v1050_v3  ;;  %v1212_v33 = vadd.f32 %v1210_v15, %v1201_v54 }
 0x16e   : > { %v907_v52 = vsel %vm418_vm8, %v906_v24, %v905_v6  ;;  %v1361_v47 = vsel %vm376_vm6, %v1360_v5, %v2579_v20 }
 0x16f   : > { %v1217_v39 = vpop.permute.xlu1 %1216  ;;  %v1066_v22 = vpop.permute.xlu0 %1065  ;;  %772 = vrot.lane.b32.xlu0 %v767_v7, %s1883_s14  ;;  %v909_v17 = vadd.f32 %v907_v52, %v898_v46  ;;  %v1354_v7 = vadd.f32 %v1352_v43, %v1343_v44  ;;  %v261_v43 = vand.u32 127, %v210_v1 }
 0x170   : > { %v1067_v50 = vrot.slane %v1066_v22, 7  ;;  %v1218_v8 = vrot.slane %v1217_v39, 7 }
 0x171   : > { %v1363_v20 = vadd.f32 %v1361_v47, %v1354_v7 }
 0x172   : > { %v1068_v9 = vsel %vm418_vm8, %v1067_v50, %v1066_v22  ;;  %v1219_v12 = vsel %vm397_vm7, %v1218_v8, %v1217_v39 }
 0x173   : > { %v914_v56 = vpop.permute.xlu1 %913  ;;  %v1370_v57 = vpop.permute.xlu0 %1369  ;;  %v1070_v26 = vadd.f32 %v1068_v9, %v1059_v59  ;;  %v1221_v25 = vadd.f32 %v1219_v12, %v1212_v33  ;;  %v262_v59 = vadd.s32 128, %v261_v43 }
 0x174   : > { %v915_v63 = vrot.slane %v914_v56, 7  ;;  %v1371_v38 = vrot.slane %v1370_v57, 7 }
 0x176   : > { %v916_v32 = vsel %vm418_vm8, %v915_v63, %v914_v56  ;;  %v1372_v24 = vsel %vm397_vm7, %v1371_v38, %v1370_v57 }
 0x177   : > { %v918_v62 = vadd.f32 %v916_v32, %v909_v17  ;;  %v1228_v14 = vpop.permute.xlu1 %1227  ;;  %v1075_v13 = vpop.permute.xlu0 %1074  ;;  %v1374_v41 = vadd.f32 %v1372_v24, %v1363_v20 }
 0x178   : > { %v1229_v6 = vrot.slane %v1228_v14, 7  ;;  %v1076_v42 = vrot.slane %v1075_v13, 7 }
 0x179   : > { %v923_v58 = vrot.slane %v918_v62, %v2529_v10  ;;  %v927_v61 = vrot.slane %v918_v62, %v2526_v29  ;;  %v931_v39 = vrot.slane %v918_v62, %v2541_v27 }
 0x17a   : > { %v1077_v28 = vsel %vm418_vm8, %v1076_v42, %v1075_v13  ;;  %v1230_v35 = vsel %vm418_vm8, %v1229_v6, %v1228_v14  ;;  %v2650_v13 = vand.u32 15, %v261_v43 }
 0x17b   : > { %v1079_v16 = vadd.f32 %v1077_v28, %v1070_v26  ;;  %v1237_v60 = vpop.permute.xlu1 %1236  ;;  %v1379_v34 = vpop.permute.xlu0 %1378  ;;  %932 = vrot.lane.b32.xlu1 %v923_v58, %s1879_s27  ;;  %934 = vrot.lane.b32.xlu0 %v927_v61, %s1879_s27  ;;  %v1232_v55 = vadd.f32 %v1230_v35, %v1221_v25 }
 0x17c   : > { %v1238_v36 = vrot.slane %v1237_v60, 7  ;;  %v1380_v19 = vrot.slane %v1379_v34, 7  ;;  %vm459_vm12 = vcmp.ge.s32.totalorder %v2650_v13, 2  ;;  %vm287_vm14 = vcmp.ge.s32.totalorder %v2650_v13, 3 }
 0x17d   : > { %v1084_v22 = vrot.slane %v1079_v16, %v2529_v10  ;;  %v1092_v23 = vrot.slane %v1079_v16, %v2541_v27  ;;  %v1088_v50 = vrot.slane %v1079_v16, %v2526_v29  ;;  %vm621_vm0 = vcmp.ge.s32.totalorder %v2650_v13, 1 }
 0x17e   : > { %v1239_v2 = vsel %vm418_vm8, %v1238_v36, %v1237_v60  ;;  %v1381_v40 = vsel %vm397_vm7, %v1380_v19, %v1379_v34  ;;  %vm948_vm3 = vcmp.lt.s32.totalorder %v2650_v13, 15  ;;  %vm1110_vm6 = vcmp.lt.s32.totalorder %v2650_v13, 14 }
 0x17f   : > { %v1390_v21 = vpop.permute.xlu0 %1389  ;;  %936 = vrot.lane.b32.xlu1 %v931_v39, %s1879_s27  ;;  %1093 = vrot.lane.b32.xlu0 %v1084_v22, %s1884_s4  ;;  %v1399_v53 = vpop.permute.xlu1 %1398  ;;  %v1241_v49 = vadd.f32 %v1239_v2, %v1232_v55  ;;  %v1383_v52 = vadd.f32 %v1381_v40, %v1374_v41  ;;  %s1885_s27 = smov 46  }
 0x180   : > { %v1391_v0 = vrot.slane %v1390_v21, 7  ;;  %v1400_v11 = vrot.slane %v1399_v53, 7 }
 0x181   : > { %v1246_v46 = vrot.slane %v1241_v49, %v2529_v10  ;;  %v1250_v56 = vrot.slane %v1241_v49, %v2526_v29  ;;  %v1254_v45 = vrot.slane %v1241_v49, %v2541_v27 }
 0x182   : > { %v1392_v31 = vsel %vm418_vm8, %v1391_v0, %v1390_v21  ;;  %v1401_v51 = vsel %vm418_vm8, %v1400_v11, %v1399_v53 }
 0x183   : > { %v1394_v48 = vadd.f32 %v1392_v31, %v1383_v52  ;;  %1095 = vrot.lane.b32.xlu1 %v1088_v50, %s1884_s4  ;;  %1097 = vrot.lane.b32.xlu0 %v1092_v23, %s1884_s4 }
 0x185   : > { %v1403_v57 = vadd.f32 %v1401_v51, %v1394_v48 }
 0x187   : > { %1255 = vrot.lane.b32.xlu1 %v1246_v46, %s1885_s27  ;;  %1257 = vrot.lane.b32.xlu0 %v1250_v56, %s1885_s27  ;;  %v1408_v37 = vrot.slane %v1403_v57, %v2529_v10  ;;  %v1412_v30 = vrot.slane %v1403_v57, %v2526_v29  ;;  %v1416_v63 = vrot.slane %v1403_v57, %v2541_v27  ;;  %v2652_v29 = vand.u32 15, %v262_v59  ;;  %v1452_v59 = vld [vmem:[%s2058_s23] sm:$0xff]  ;;  %s1799_s23 = scalar_lea.vmem %s2693_s3, 128 }
 0x188   : > { %p1800_p8 = scmp.ne.s32.totalorder %s2693_s3, %s1799_s23  ;;  %p1807_p2 = scmp.lt.s32.totalorder %s1805_s21, %s1799_s23 }
 0x189   : > { %vm460_vm13 = vcmp.ge.s32.totalorder %v2652_v29, 2  ;;  %vm288_vm15 = vcmp.ge.s32.totalorder %v2652_v29, 3  ;;  %vm622_vm1 = vcmp.ge.s32.totalorder %v2652_v29, 1  ;;  %vm949_vm4 = vcmp.lt.s32.totalorder %v2652_v29, 15 }
 0x18a   : > { %vm1111_vm8 = vcmp.lt.s32.totalorder %v2652_v29, 14  ;;  %p1801_p11 = pnand %p1800_p8, %p2763_p9  ;;  %p1808_p12 = por %p1807_p2, %p1806_p1 }
 0x18b   : > { %1259 = vrot.lane.b32.xlu1 %v1254_v45, %s1885_s27  ;;  %1417 = vrot.lane.b32.xlu0 %v1408_v37, %s1886_s22 }
 0x18c   : > { %p1802_p5 = pneg %p1801_p11 }
 0x18e   : > { %p1809_p0 = pnand %p1808_p12, %p1802_p5 }
 0x18f   : > { %1419 = vrot.lane.b32.xlu1 %v1412_v30, %s1886_s22  ;;  %1421 = vrot.lane.b32.xlu0 %v1416_v63, %s1886_s22 }
 0x1d1   : > { %v445_v18 = vpop.permute.xlu0 %444  ;;  %v447_v3 = vpop.permute.xlu1 %446 }
 0x1d2   : > { %v451_v54 = vsel %vm450_vm10, %v445_v18, %v447_v3 }
 0x1d3   : > { %v455_v28 = vsel %vm287_vm14, %v451_v54, 0.0 }
 0x1d5   : > { %v449_v4 = vpop.permute.xlu0 %448  ;;  %v607_v17 = vpop.permute.xlu1 %606 }
 0x1d6   : > { %v452_v26 = vsel %vm450_vm10, %v447_v3, %v449_v4  ;;  %vm1273_vm10 = vcmp.lt.s32.totalorder %v2652_v29, 13 }
 0x1d7   : > { %v456_v7 = vsel %vm288_vm15, %v452_v26, 0.0 }
 0x1d9   : > { %v609_v5 = vpop.permute.xlu0 %608  ;;  %v611_v8 = vpop.permute.xlu1 %610 }
 0x1da   : > { %v613_v38 = vsel %vm612_vm9, %v607_v17, %v609_v5  ;;  %v614_v6 = vsel %vm612_vm9, %v609_v5, %v611_v8  ;;  %vm1272_vm9 = vcmp.lt.s32.totalorder %v2650_v13, 13 }
 0x1db   : > { %v617_v47 = vsel %vm459_vm12, %v613_v38, 0.0  ;;  %v618_v12 = vsel %vm460_vm13, %v614_v6, 0.0 }
 0x1dc   : > { %v619_v24 = vadd.f32 %v617_v47, %v455_v28  ;;  %v620_v35 = vadd.f32 %v618_v12, %v456_v7 }
 0x1dd   : > { %v769_v9 = vpop.permute.xlu0 %768  ;;  %v771_v32 = vpop.permute.xlu1 %770 }
 0x1de   : > { %v775_v58 = vsel %vm774_vm11, %v769_v9, %v771_v32 }
 0x1df   : > { %v779_v33 = vsel %vm621_vm0, %v775_v58, 0.0 }
 0x1e0   : > { %v781_v39 = vadd.f32 %v779_v33, %v619_v24 }
 0x1e1   : > { %v773_v44 = vpop.permute.xlu0 %772 }
 0x1e2   : > { %v776_v61 = vsel %vm774_vm11, %v771_v32, %v773_v44 }
 0x1e3   : > { %v780_v16 = vsel %vm622_vm1, %v776_v61, 0.0 }
 0x1e4   : > { %v782_v22 = vadd.f32 %v780_v16, %v620_v35 }
 0x1ed   : > { %v933_v62 = vpop.permute.xlu1 %932  ;;  %v935_v14 = vpop.permute.xlu0 %934 }
 0x1ee   : > { %v938_v20 = vsel %vm397_vm7, %v933_v62, %v935_v14 }
 0x1ef   : > { %v944_v53 = vadd.f32 %v938_v20, %v781_v39 }
 0x1f1   : > { %v937_v27 = vpop.permute.xlu1 %936  ;;  %v1094_v15 = vpop.permute.xlu0 %1093 }
 0x1f2   : > { %v939_v25 = vsel %vm397_vm7, %v935_v14, %v937_v27  ;;  %vm1423_vm7 = vcmask 367616  }
 0x1f3   : > { %v945_v0 = vadd.f32 %v939_v25, %v782_v22 }
 0x1f5   : > { %v1096_v1 = vpop.permute.xlu1 %1095  ;;  %v1098_v42 = vpop.permute.xlu0 %1097 }
 0x1f6   : > { %v1100_v36 = vsel %vm1099_vm2, %v1094_v15, %v1096_v1  ;;  %v1101_v19 = vsel %vm1099_vm2, %v1096_v1, %v1098_v42 }
 0x1f7   : > { %v1104_v40 = vsel %vm948_vm3, %v1100_v36, 0.0  ;;  %v1105_v41 = vsel %vm949_vm4, %v1101_v19, 0.0 }
 0x1f8   : > { %v1106_v52 = vadd.f32 %v1104_v40, %v944_v53  ;;  %v1107_v50 = vadd.f32 %v1105_v41, %v945_v0 }
 0x1f9   : > { %v1256_v60 = vpop.permute.xlu1 %1255  ;;  %v1258_v34 = vpop.permute.xlu0 %1257 }
 0x1fa   : > { %v1262_v2 = vsel %vm1261_vm5, %v1256_v60, %v1258_v34 }
 0x1fb   : > { %v1266_v23 = vsel %vm1110_vm6, %v1262_v2, 0.0 }
 0x1fc   : > { %v1268_v48 = vadd.f32 %v1266_v23, %v1106_v52 }
 0x1fd   : > { %v1260_v55 = vpop.permute.xlu1 %1259  ;;  %v1418_v21 = vpop.permute.xlu0 %1417 }
 0x1fe   : > { %v1263_v11 = vsel %vm1261_vm5, %v1258_v34, %v1260_v55 }
 0x1ff   : > { %v1267_v49 = vsel %vm1111_vm8, %v1263_v11, 0.0 }
 0x200   : > { %v1269_v46 = vadd.f32 %v1267_v49, %v1107_v50 }
 0x201   : > { %v1420_v31 = vpop.permute.xlu1 %1419  ;;  %v1422_v51 = vpop.permute.xlu0 %1421 }
 0x202   : > { %v1424_v56 = vsel %vm1423_vm7, %v1418_v21, %v1420_v31  ;;  %v1425_v57 = vsel %vm1423_vm7, %v1420_v31, %v1422_v51 }
 0x203   : > { %v1428_v45 = vsel %vm1272_vm9, %v1424_v56, 0.0  ;;  %v1429_v37 = vsel %vm1273_vm10, %v1425_v57, 0.0 }
 0x204   : > { %v1430_v30 = vadd.f32 %v1428_v45, %v1268_v48  ;;  %v1431_v63 = vadd.f32 %v1429_v37, %v1269_v46 }
 0x206   : > { %v1667_v18 = vmul.f32 -1.442695, %v1430_v30  ;;  %v1668_v3 = vmul.f32 -1.442695, %v1431_v63 }
 0x208   : > { %1748 = vpow2.f32 %v1667_v18 }
 0x209   : > { %1750 = vpow2.f32 %v1668_v3 }
 0x212   : > { %v1749_v4 = vpop.eup %1748 }
 0x213   : > { %v1751_v17 = vpop.eup %1750  ;;  %v1438_v5 = vadd.f32 1.0, %v1749_v4 }
 0x214   : > { %v1439_v8 = vadd.f32 1.0, %v1751_v17 }
 0x215   : > { %1752 = vrcp.f32 %v1438_v5 }
 0x216   : > { %1754 = vrcp.f32 %v1439_v8 }
 0x21f   : > { %v1753_v9 = vpop.eup %1752 }
 0x220   : > { %v1755_v32 = vpop.eup %1754  ;;  %v1447_v44 = vrot.slane %v1753_v9, %v2529_v10 }
 0x221   : > { %v1451_v43 = vrot.slane %v1755_v32, %v2529_v10 }
 0x223   : > { %v1455_v62 = vcombine.low %v1447_v44, %v1451_v43 }
 0x225   : > { %v1457_v14 = vmul.f32 %v1455_v62, %v1452_v59 }
 0x227   : > { %v1458_v13 = vmax.f32 %v1457_v14, 0.0 }
 0x229   : > { %1461 = vst [vmem:[%s171_s26] sm:$0xff] %v1458_v13 }
 0x22a   : > { %1812 = shalt.err (!%p1809_p0)
}
 0x22b   : > { %s1813_s19 = scalar_lea.hbm %s2691_s15, 128  ;;  %s1817_s7 = scalar_lea.hbm %s2737_s2, 256 }
 0x22c   : > { %p1814_p3 = scmp.ne.s32.totalorder %s2691_s15, %s1813_s19  ;;  %p1818_p6 = scmp.lt.u32.totalorder %s2691_s15, %s2737_s2 }
 0x22d   : > { %p1819_p13 = scmp.lt.u32.totalorder %s1817_s7, %s1813_s19  ;;  %p1821_p8 = scmp.lt.u32.totalorder %s1813_s19, %s2691_s15 }
 0x22e   : > { %p1815_p7 = pnand %p1814_p3, %p2763_p9 }
 0x22f   : > { %p1820_p4 = por %p1819_p13, %p1818_p6 }
 0x230   : > { %p1816_p10 = pneg %p1815_p7 }
 0x231   : > { %p1822_p11 = por %p1821_p8, %p1820_p4 }
 0x233   : > { %p1823_p5 = pnand %p1822_p11, %p1816_p10 }
 0x235   : > { %1826 = shalt.err (!%p1823_p5)
}
 0x236   : > { %1682 = dma.vmem_to_hbm [thread:$0]  (%p2763_p9), %s2693_s3, 128, %s2691_s15, %s1463_s17  }
 0x237 PF: > { %s1489_s27 = sand.u32 1, %s1857_s9   ;;  %p2764_p1 = scmp.ne.s32.totalorder %s2749_s16, 0 }
 0x238   : > { %p2765_p2 = scmp.ge.s32.totalorder %s1869_s12, 2  ;;  %s1490_s22 = scalar_lea.sflag [#allocation6], %s1489_s27 }
 0x23a   : > { %p1693_p12 = pnand %p2765_p2, %p2764_p1 }
 0x23c   : > { %1852 = dma.done.wait (!%p1693_p12), %s1490_s22, 128  }
 0x23d   : > { %1854 = vsyncadd (!%p1693_p12), %s1490_s22, 4294967168  ;;  %p16_p0 = scmp.ge.s32.totalorder %s1949_s18, 4   ;;  %s2766_s9 = smov %s1861_s10 }
 0x23e   : > { %s2767_s10 = smov %s1865_s11  ;;  %s2768_s11 = smov %s1989_s5 }
 0x23f   : > { %s2769_s12 = smov %s1949_s18  ;;  %18 = sbr.rel (!%p16_p0) target bundleno = 6 (0x6), region = 80 }
 0x246   :  { %1495 = vsyncpa [#allocation5], 1 }
 0x247   :  { %1497 = vsyncpa [#allocation5 + $0x1], 1 }
 0x248   :  { %1498 = vsyncpa [#allocation6], 1 }
 0x249   :  { %1500 = vsyncpa [#allocation6 + $0x1], 1 }
 0x24a   :  { %1501 = vsyncpa [#allocation7], 1 }
 0x24b   :  { %1503 = vsyncpa [#allocation7 + $0x1], 1 }

</bundles_post_ra>
